<compile_context>
chip_gen: v7x
topology: tpu7x:2x2x1
jax: 0.10.0
libtpu: 0.0.40
codegen_flags: <defaults>
</compile_context>

<pallas_src>
import functools
import math

import jax
import jax.numpy as jnp
from jax.experimental import pallas as pl
from jax.experimental.pallas import tpu as pltpu


def _round_up(v, m):
    return (v + m - 1) // m * m


# ----------------------------------------------------------------------------
# Pallas kernel: 3 fused-gate MXU dots (one per kh) + f32 GRU update,
# one whole (padded) image per grid step.
# ----------------------------------------------------------------------------
def _conv_gru_kernel(s3_ref, h_ref, w_ref, b_ref, o_ref, *, wp, out_h, ch_pad):
    """
    s3_ref : ((out_h + 2) * wp, 3*C)  bf16  width-im2col of the zero-padded [x|h] stack
    h_ref  : (out_h * wp, ch_pad)     f32   prev hidden state, slot layout (blend path)
    w_ref  : (3, 3*C, 2*ch_pad)       bf16  per-kh stacked [update | cand] weights
    b_ref  : (1, 2*ch_pad)            f32
    o_ref  : (out_h * wp, ch_pad)     f32   new hidden state, slot layout

    Slot p = out_row * wp + out_col.  The kh tap group of slot p is row p + kh*wp of
    s3_ref (its 3*C lanes are the kw = 0,1,2 taps concatenated), so each tap group is
    a contiguous, statically sublane-aligned slice (wp % 16 == 0).
    """
    q = out_h * wp                                  # output slots in this image

    acc = jnp.zeros((q, 2 * ch_pad), jnp.float32)
    for kh in range(3):                             # static offsets kh*wp: multiples of 16
        tap = s3_ref[kh * wp: kh * wp + q, :]       # free view, no copy
        acc = acc + jnp.dot(tap, w_ref[kh],         # (3*C, 2*ch_pad) bf16
                            preferred_element_type=jnp.float32)
    gates = acc + b_ref[...]                        # f32

    update = jax.nn.sigmoid(gates[:, :ch_pad])      # lane-tile aligned (ch_pad % 128 == 0)
    cand = jnp.tanh(gates[:, ch_pad:])

    h_prev = h_ref[...]                             # f32, never bf16-rounded on this path
    # h_new = h*(1-u) + cand*u
    o_ref[...] = h_prev + update * (cand - h_prev)


# ----------------------------------------------------------------------------
# Wrapper: NCHW glue, width im2col, gate-fused lane-padded weights, pallas_call.
# ----------------------------------------------------------------------------
@jax.jit
def convgru_cell_forward(x_nchw, prev_state, params):
    """ConvGRUCell_out.forward.  Returns the new hidden state, NCHW float32."""
    n, c_in, hgt, wdt = x_nchw.shape
    c_hid = params["w_update"].shape[0]
    if prev_state is None:
        prev_state = jnp.zeros((n, c_hid, hgt, wdt), x_nchw.dtype)

    c = c_in + c_hid
    ch_pad = _round_up(c_hid, 128)        # lane-dense gate / output width
    wp = _round_up(wdt + 2, 16)           # padded width, bf16 sublane-tile aligned
    q = hgt * wp                          # output slots per image (incl. padded cols)
    r3 = (hgt + 2) * wp                   # im2col rows streamed per image
    k3 = 3 * c                            # contraction length after the kw fold

    # ---- conv operand: NCHW -> NHWC, stack [x|h] channels, bf16, pad, width im2col ----
    x_nhwc = jnp.transpose(x_nchw, (0, 2, 3, 1))
    h_nhwc = jnp.transpose(prev_state, (0, 2, 3, 1)).astype(jnp.float32)
    s = jnp.concatenate([x_nhwc, h_nhwc], axis=-1).astype(jnp.bfloat16)    # (N,H,W,C)
    # rows: 1 top conv pad + 2 bottom (1 conv pad + 1 slack row for the im2col shift);
    # cols: 1 left conv pad + (wp - W - 1) right (conv pad + alignment pad).
    s_pad = jnp.pad(s, ((0, 0), (1, 2), (1, wp - wdt - 1), (0, 0)))        # (N,H+3,wp,C)
    s_flat = s_pad.reshape(n, (hgt + 3) * wp, c)
    # width-direction im2col: row r holds the kw = 0,1,2 taps of slot r along lanes.
    s3 = jnp.concatenate([s_flat[:, 0:r3], s_flat[:, 1:r3 + 1], s_flat[:, 2:r3 + 2]],
                         axis=-1)                                          # (N, r3, 3*C)
    # TODO(synk): on v7x (HBM headroom) optionally fold all 9 taps into K (full im2col).

    # ---- f32 prev state in output slot layout (blend path; never rounded to bf16) ----
    h_slots = jnp.pad(h_nhwc, ((0, 0), (0, 0), (0, wp - wdt), (0, ch_pad - c_hid)))
    h_slots = h_slots.reshape(n, q, ch_pad)

    # ---- weights: torch OIHW -> (kh, kw*C, out); gate-stacked and lane-padded ----
    def prep_w(w):  # (c_hid, C, 3, 3) -> (3, 3*C, ch_pad)
        w = jnp.transpose(w, (2, 3, 1, 0)).reshape(3, k3, c_hid)
        return jnp.pad(w, ((0, 0), (0, 0), (0, ch_pad - c_hid)))

    w_all = jnp.concatenate([prep_w(params["w_update"]), prep_w(params["w_out"])],
                            axis=-1).astype(jnp.bfloat16)                  # (3, 3C, 2*ch_pad)
    b_all = jnp.concatenate(
        [jnp.pad(params["b_update"], (0, ch_pad - c_hid)),
         jnp.pad(params["b_out"], (0, ch_pad - c_hid))]).reshape(1, 2 * ch_pad)
    b_all = b_all.astype(jnp.float32)

    # ---- per-generation-safe VMEM budget (v7x: 64 MiB/core; v5e/v6e: 128 MiB) ----
    est = 2 * (r3 * k3 * 2                # double-buffered bf16 im2col slab
               + 2 * q * ch_pad * 4       # f32 prev-state in + f32 state out
               + 3 * k3 * 2 * ch_pad * 2  # resident weights
               + 2 * ch_pad * 4)          # bias
    try:
        vmem_cap = pltpu.get_tpu_info().vmem_capacity_bytes
    except Exception:                     # fall back to the smallest generation (v7x)
        vmem_cap = 64 * 1024 * 1024
    vmem_limit = int(min(vmem_cap * 5 // 8, max(32 * 1024 * 1024, 2 * est)))
    # TODO(synk): for images whose per-image footprint exceeds this budget, row-tile the
    # image inside the kernel with pltpu.emit_pipeline instead of one whole-image block.

    assert 2 * wp + q == r3               # kernel tap slices are exactly in-bounds

    kernel = functools.partial(_conv_gru_kernel, wp=wp, out_h=hgt, ch_pad=ch_pad)

    out_slots = pl.pallas_call(
        kernel,
        out_shape=jax.ShapeDtypeStruct((n, q, ch_pad), jnp.float32),
        grid_spec=pltpu.PrefetchScalarGridSpec(
            num_scalar_prefetch=0,
            grid=(n,),
            in_specs=[
                pl.BlockSpec((None, r3, k3), lambda b: (b, 0, 0)),        # im2col slab
                pl.BlockSpec((None, q, ch_pad), lambda b: (b, 0, 0)),     # f32 prev state
                pl.BlockSpec((3, k3, 2 * ch_pad), lambda b: (0, 0, 0)),   # resident weights
                pl.BlockSpec((1, 2 * ch_pad), lambda b: (0, 0)),          # resident bias
            ],
            out_specs=pl.BlockSpec((None, q, ch_pad), lambda b: (b, 0, 0)),
        ),
        compiler_params=pltpu.CompilerParams(
            dimension_semantics=("parallel",),
            vmem_limit_bytes=vmem_limit),
    )(s3, h_slots, w_all, b_all)

    # ---- unpack: drop alignment pad columns / lanes, back to NCHW f32 ----
    # TODO(synk): in a recurrent rollout, feed `out_slots` (slot layout, f32) straight
    # into the next step's h inputs to skip this slice + transpose HBM pass.
    out = out_slots.reshape(n, hgt, wp, ch_pad)[:, :, :wdt, :c_hid]
    return jnp.transpose(out, (0, 3, 1, 2))


# ----------------------------------------------------------------------------
# Pure-JAX reference (lax.conv, NCHW) for the correctness checks.
# ----------------------------------------------------------------------------
def _ref_forward(x, h_blend, p, h_conv=None):
    if h_conv is None:
        h_conv = h_blend
    s = jnp.concatenate([x, h_conv], axis=1)

    def conv(w, b):
        out = jax.lax.conv_general_dilated(
            s, w, window_strides=(1, 1), padding=[(1, 1), (1, 1)],
            dimension_numbers=("NCHW", "OIHW", "NCHW"))
        return out + b[None, :, None, None]

    update = jax.nn.sigmoid(conv(p["w_update"], p["b_update"]))
    cand = jnp.tanh(conv(p["w_out"], p["b_out"]))
    return h_blend * (1.0 - update) + cand * update


if __name__ == "__main__":
    key = jax.random.PRNGKey(0)
    kwu, kwo, kbu, kbo, kx, kh = jax.random.split(key, 6)

    N, C_IN, C_HID, H, W, KS = 2, 4, 32, 16, 16, 3
    std = 1.0 / math.sqrt((C_IN + C_HID) * KS * KS)
    params = {
        "w_update": std * jax.random.normal(kwu, (C_HID, C_IN + C_HID, KS, KS), jnp.float32),
        "w_out":    std * jax.random.normal(kwo, (C_HID, C_IN + C_HID, KS, KS), jnp.float32),
        "b_update": 0.1 * jax.random.normal(kbu, (C_HID,), jnp.float32),
        "b_out":    0.1 * jax.random.normal(kbo, (C_HID,), jnp.float32),
    }
    x = jax.random.normal(kx, (N, C_IN, H, W), jnp.float32)
    h0 = jax.random.normal(kh, (N, C_HID, H, W), jnp.float32)

    h1 = convgru_cell_forward(x, h0, params)
    jax.block_until_ready(h1)
    assert h1.shape == (N, C_HID, H, W)

    # Tight check: reference fed the same bf16-rounded conv operands (but f32 h on the
    # blend path, matching the kernel); only accumulation-order / transcendental
    # differences remain.
    xr = x.astype(jnp.bfloat16).astype(jnp.float32)
    hr = h0.astype(jnp.bfloat16).astype(jnp.float32)
    pr = {k: (v.astype(jnp.bfloat16).astype(jnp.float32) if k.startswith("w") else v)
          for k, v in params.items()}
    ref_tight = _ref_forward(xr, h0, pr, h_conv=hr)
    err_tight = float(jnp.max(jnp.abs(h1 - ref_tight)))
    assert jnp.allclose(h1, ref_tight, atol=5e-3, rtol=5e-3), f"tight mismatch {err_tight}"

    # Loose check against the full-f32 reference (bounds the bf16 streaming error).
    ref_f32 = _ref_forward(x, h0, params)
    err_loose = float(jnp.max(jnp.abs(h1 - ref_f32)))
    assert jnp.allclose(h1, ref_f32, atol=1e-1, rtol=1e-1), f"loose mismatch {err_loose}"

    print("KERNEL_OK")
</pallas_src>

<mosaic_0001>
module attributes {stable_mosaic.version = 11 : i64} {
  func.func @_conv_gru_kernel(%arg0: i32, %arg1: memref<1x576x108xbf16, #tpu.memory_space<vmem>>, %arg2: memref<1x512x128xf32, #tpu.memory_space<vmem>>, %arg3: memref<3x108x256xbf16, #tpu.memory_space<vmem>>, %arg4: memref<1x256xf32, #tpu.memory_space<vmem>>, %arg5: memref<1x512x128xf32, #tpu.memory_space<vmem>>) attributes {dimension_semantics = [#tpu.dimension_semantics<parallel>], iteration_bounds = array<i64: 2>, scalar_prefetch = 0 : i64, scratch_operands = 0 : i64, tpu.core_type = #tpu.core_type<tc>, window_params = [{transform_indices = @transform_0, window_bounds = array<i64: 1, 576, 108>}, {transform_indices = @transform_1, window_bounds = array<i64: 1, 512, 128>}, {pipeline_mode = #tpu.pipeline_mode<synchronous>, transform_indices = @transform_2, window_bounds = array<i64: 3, 108, 256>}, {pipeline_mode = #tpu.pipeline_mode<synchronous>, transform_indices = @transform_3, window_bounds = array<i64: 1, 256>}, {transform_indices = @transform_4, window_bounds = array<i64: 1, 512, 128>}]} {
    %cst = arith.constant 0.000000e+00 : f32
    %0 = vector.broadcast %cst : f32 to vector<512x256xf32>
    %c0 = arith.constant 0 : index
    %c0_0 = arith.constant 0 : index
    %c0_1 = arith.constant 0 : index
    %1 = vector.load %arg1[%c0, %c0_0, %c0_1] : memref<1x576x108xbf16, #tpu.memory_space<vmem>>, vector<1x512x108xbf16>
    %2 = vector.shape_cast %1 : vector<1x512x108xbf16> to vector<512x108xbf16>
    %c0_2 = arith.constant 0 : index
    %c0_3 = arith.constant 0 : index
    %c0_4 = arith.constant 0 : index
    %3 = vector.load %arg3[%c0_2, %c0_3, %c0_4] : memref<3x108x256xbf16, #tpu.memory_space<vmem>>, vector<1x108x256xbf16>
    %4 = vector.shape_cast %3 : vector<1x108x256xbf16> to vector<108x256xbf16>
    %cst_5 = arith.constant dense<0.000000e+00> : vector<512x256xf32>
    %5 = tpu.matmul %2, %4, %cst_5 {dimension_numbers = #tpu.dot_dimension_numbers<[1], [0], [0], [1], [0, 0, 1, 1], [], []>} : vector<512x108xbf16>, vector<108x256xbf16>, vector<512x256xf32> -> vector<512x256xf32>
    %6 = arith.addf %0, %5 : vector<512x256xf32>
    %c0_6 = arith.constant 0 : index
    %c32 = arith.constant 32 : index
    %c0_7 = arith.constant 0 : index
    %7 = vector.load %arg1[%c0_6, %c32, %c0_7] : memref<1x576x108xbf16, #tpu.memory_space<vmem>>, vector<1x512x108xbf16>
    %8 = vector.shape_cast %7 : vector<1x512x108xbf16> to vector<512x108xbf16>
    %c1 = arith.constant 1 : index
    %c0_8 = arith.constant 0 : index
    %c0_9 = arith.constant 0 : index
    %9 = vector.load %arg3[%c1, %c0_8, %c0_9] : memref<3x108x256xbf16, #tpu.memory_space<vmem>>, vector<1x108x256xbf16>
    %10 = vector.shape_cast %9 : vector<1x108x256xbf16> to vector<108x256xbf16>
    %cst_10 = arith.constant dense<0.000000e+00> : vector<512x256xf32>
    %11 = tpu.matmul %8, %10, %cst_10 {dimension_numbers = #tpu.dot_dimension_numbers<[1], [0], [0], [1], [0, 0, 1, 1], [], []>} : vector<512x108xbf16>, vector<108x256xbf16>, vector<512x256xf32> -> vector<512x256xf32>
    %12 = arith.addf %6, %11 : vector<512x256xf32>
    %c0_11 = arith.constant 0 : index
    %c64 = arith.constant 64 : index
    %c0_12 = arith.constant 0 : index
    %13 = vector.load %arg1[%c0_11, %c64, %c0_12] : memref<1x576x108xbf16, #tpu.memory_space<vmem>>, vector<1x512x108xbf16>
    %14 = vector.shape_cast %13 : vector<1x512x108xbf16> to vector<512x108xbf16>
    %c2 = arith.constant 2 : index
    %c0_13 = arith.constant 0 : index
    %c0_14 = arith.constant 0 : index
    %15 = vector.load %arg3[%c2, %c0_13, %c0_14] : memref<3x108x256xbf16, #tpu.memory_space<vmem>>, vector<1x108x256xbf16>
    %16 = vector.shape_cast %15 : vector<1x108x256xbf16> to vector<108x256xbf16>
    %cst_15 = arith.constant dense<0.000000e+00> : vector<512x256xf32>
    %17 = tpu.matmul %14, %16, %cst_15 {dimension_numbers = #tpu.dot_dimension_numbers<[1], [0], [0], [1], [0, 0, 1, 1], [], []>} : vector<512x108xbf16>, vector<108x256xbf16>, vector<512x256xf32> -> vector<512x256xf32>
    %18 = arith.addf %12, %17 : vector<512x256xf32>
    %c0_16 = arith.constant 0 : index
    %c0_17 = arith.constant 0 : index
    %19 = vector.load %arg4[%c0_16, %c0_17] : memref<1x256xf32, #tpu.memory_space<vmem>>, vector<1x256xf32>
    %20 = vector.broadcast %19 : vector<1x256xf32> to vector<512x256xf32>
    %21 = arith.addf %18, %20 : vector<512x256xf32>
    %22 = vector.extract_strided_slice %21 {offsets = [0, 0], sizes = [512, 128], strides = [1, 1]} : vector<512x256xf32> to vector<512x128xf32>
    %23 = arith.negf %22 : vector<512x128xf32>
    %24 = math.exp %23 : vector<512x128xf32>
    %cst_18 = arith.constant 1.000000e+00 : f32
    %25 = vector.broadcast %cst_18 : f32 to vector<512x128xf32>
    %26 = arith.addf %25, %24 : vector<512x128xf32>
    %27 = arith.divf %25, %26 : vector<512x128xf32>
    %28 = vector.extract_strided_slice %21 {offsets = [0, 128], sizes = [512, 128], strides = [1, 1]} : vector<512x256xf32> to vector<512x128xf32>
    %29 = math.tanh %28 : vector<512x128xf32>
    %c0_19 = arith.constant 0 : index
    %c0_20 = arith.constant 0 : index
    %c0_21 = arith.constant 0 : index
    %30 = vector.load %arg2[%c0_19, %c0_20, %c0_21] : memref<1x512x128xf32, #tpu.memory_space<vmem>>, vector<1x512x128xf32>
    %31 = vector.shape_cast %30 : vector<1x512x128xf32> to vector<512x128xf32>
    %32 = arith.subf %29, %31 : vector<512x128xf32>
    %33 = arith.mulf %27, %32 : vector<512x128xf32>
    %34 = arith.addf %31, %33 : vector<512x128xf32>
    %c0_22 = arith.constant 0 : index
    %c0_23 = arith.constant 0 : index
    %c0_24 = arith.constant 0 : index
    %35 = vector.load %arg5[%c0_22, %c0_23, %c0_24] : memref<1x512x128xf32, #tpu.memory_space<vmem>>, vector<1x512x128xf32>
    %36 = vector.shape_cast %35 : vector<1x512x128xf32> to vector<512x128xf32>
    %37 = vector.shape_cast %34 : vector<512x128xf32> to vector<1x512x128xf32>
    tpu.vector_store %arg5[%c0_22, %c0_23, %c0_24], %37 {strides = array<i32>} : memref<1x512x128xf32, #tpu.memory_space<vmem>>, vector<1x512x128xf32>,
    return
  }
  func.func @transform_0(%arg0: i32) -> (i32, i32, i32) {
    %c0_i32 = arith.constant 0 : i32
    %c0_i32_0 = arith.constant 0 : i32
    %c0_i32_1 = arith.constant 0 : i32
    return %arg0, %c0_i32, %c0_i32_0 : i32, i32, i32
  }
  func.func @transform_1(%arg0: i32) -> (i32, i32, i32) {
    %c0_i32 = arith.constant 0 : i32
    %c0_i32_0 = arith.constant 0 : i32
    %c0_i32_1 = arith.constant 0 : i32
    return %arg0, %c0_i32, %c0_i32_0 : i32, i32, i32
  }
  func.func @transform_2(%arg0: i32) -> (i32, i32, i32) {
    %c0_i32 = arith.constant 0 : i32
    %c0_i32_0 = arith.constant 0 : i32
    %c0_i32_1 = arith.constant 0 : i32
    %c0_i32_2 = arith.constant 0 : i32
    return %c0_i32, %c0_i32_0, %c0_i32_1 : i32, i32, i32
  }
  func.func @transform_3(%arg0: i32) -> (i32, i32) {
    %c0_i32 = arith.constant 0 : i32
    %c0_i32_0 = arith.constant 0 : i32
    %c0_i32_1 = arith.constant 0 : i32
    return %c0_i32, %c0_i32_0 : i32, i32
  }
  func.func @transform_4(%arg0: i32) -> (i32, i32, i32) {
    %c0_i32 = arith.constant 0 : i32
    %c0_i32_0 = arith.constant 0 : i32
    %c0_i32_1 = arith.constant 0 : i32
    return %arg0, %c0_i32, %c0_i32_0 : i32, i32, i32
  }
}

</mosaic_0001>

<bundles_post_ra>
// kernel: convgru_cell_forward.1
= control target key start
LH: loop header
LB: loop body
LE: loop exit
PB: predicated region body
PF: predicated region fallthrough
CT: control target
= control target key end

     0   :  { %s4449_s15 = smov 0   ;;  %s5453_s0 = inlined_call_operand.vmem [shape: bf16[2,576,108], index: 0, kind: input, shape index: {}]   ;;  %s5454_s1 = inlined_call_operand.vmem [shape: f32[2,512,128], index: 1, kind: input, shape index: {}]   ;;  %s5455_s2 = inlined_call_operand.vmem [shape: bf16[3,108,256], index: 2, kind: input, shape index: {}]   ;;  %s5456_s3 = inlined_call_operand.vmem [shape: f32[1,256], index: 3, kind: input, shape index: {}]   ;;  %s5457_s4 = inlined_call_operand.vmem [shape: f32[2,512,128], index: 4, kind: output, shape index: {}]  }
   0x1 LB: > { %s3309_s16 = sadd.s32 4294967295, %s4421_s15   ;;  %p3313_p0 = scmp.ge.s32.totalorder %s4421_s15, 1  ;;  %s4421_s15 = sphi %s4449_s15, %s14_s15  }
   0x2   : > { %p172_p1 = scmp.lt.s32.totalorder %s4421_s15, 3 }
   0x4   : > { %p173_p2 = pnand %p3313_p0, %p172_p1 }
   0x6   : > { %176 = sbr.rel (%p173_p2) target bundleno = 670 (0x29e), region = 36 }
   0xd   : > { %v3902_v0 = vld [vmem:[%s5455_s2 + $0x74] ss:$8 sps:$4 sm:$0xff]   ;;  %v4463_v1 = vld [vmem:[%s5455_s2 + $0x4] ss:$8 sps:$4 sm:$0xff]   ;;  %v5458_v2 = vmov 0   ;;  %p203_p3 = scmp.lt.s32.totalorder %s3309_s16, 1 }
   0xe   : > { %680 = vmatprep.mubr.bf16.mxu1 %v5458_v2  ;;  %1123 = vmatprep.mubr.bf16.mxu0 %v5458_v2  ;;  %v3906_v3 = vld [vmem:[%s5455_s2 + $0x70] ss:$8 sps:$4 sm:$0xff]   ;;  %v4473_v4 = vld [vmem:[%s5455_s2] ss:$8 sps:$4 sm:$0xff]   ;;  %v3908_v5 = vld [vmem:[%s5455_s2 + $0x84] ss:$8 sps:$4 sm:$0xff]  }
   0xf   : > { %648 = vmatprep.subr.bf16.mxu1 %v3902_v0  ;;  %1091 = vmatprep.subr.bf16.mxu0 %v4463_v1  ;;  %v4483_v6 = vld [vmem:[%s5455_s2 + $0x14] ss:$8 sps:$4 sm:$0xff]   ;;  %v3912_v7 = vld [vmem:[%s5455_s2 + $0x80] ss:$8 sps:$4 sm:$0xff]   ;;  %v4491_v8 = vld [vmem:[%s5455_s2 + $0x10] ss:$8 sps:$4 sm:$0xff]  }
  0x10   : > { %649 = vmatpush1.bf16.msra.mxu1 %v3906_v3  ;;  %1092 = vmatpush1.bf16.msra.mxu0 %v4473_v4  ;;  %v3914_v9 = vld [vmem:[%s5455_s2 + $0x94] ss:$8 sps:$4 sm:$0xff]   ;;  %v4502_v10 = vld [vmem:[%s5455_s2 + $0x24] ss:$8 sps:$4 sm:$0xff]   ;;  %v3918_v11 = vld [vmem:[%s5455_s2 + $0x90] ss:$8 sps:$4 sm:$0xff]  }
  0x11   : > { %650 = vmatprep.subr.bf16.mxu1 %v3908_v5  ;;  %1093 = vmatprep.subr.bf16.mxu0 %v4483_v6  ;;  %v4510_v12 = vld [vmem:[%s5455_s2 + $0x20] ss:$8 sps:$4 sm:$0xff]   ;;  %v3920_v13 = vld [vmem:[%s5455_s2 + $0xa4] ss:$8 sps:$4 sm:$0xff]   ;;  %v4520_v14 = vld [vmem:[%s5455_s2 + $0x34] ss:$8 sps:$4 sm:$0xff]  }
  0x12   : > { %s5504_s16 = smov (!%p203_p3, %s3309_s16), 1  ;;  %v3924_v15 = vld [vmem:[%s5455_s2 + $0xa0] ss:$8 sps:$4 sm:$0xff]   ;;  %v4533_v16 = vld [vmem:[%s5455_s2 + $0x30] ss:$8 sps:$4 sm:$0xff]   ;;  %vm641_vm0 = vcmask 1045504  }
  0x13   : > { %v3926_v17 = vld [vmem:[%s5455_s2 + $0xb4] ss:$8 sps:$4 sm:$0xff]   ;;  %v4542_v18 = vld [vmem:[%s5455_s2 + $0x44] ss:$8 sps:$4 sm:$0xff]   ;;  %s3892_s29 = smul.u32 288, %s5504_s16  ;;  %vm544_vm1 = vcmask 883712  }
  0x14   : > { %651 = vmatpush1.bf16.msra.mxu1 %v3912_v7  ;;  %1094 = vmatpush1.bf16.msra.mxu0 %v4491_v8  ;;  %v3930_v19 = vld [vmem:[%s5455_s2 + $0xb0] ss:$8 sps:$4 sm:$0xff]   ;;  %v4551_v20 = vld [vmem:[%s5455_s2 + $0x40] ss:$8 sps:$4 sm:$0xff]   ;;  %v3932_v21 = vld [vmem:[%s5455_s2 + $0xc4] ss:$8 sps:$4 sm:$0xff]  }
  0x15   : > { %652 = vmatprep.subr.bf16.mxu1 %v3914_v9  ;;  %1095 = vmatprep.subr.bf16.mxu0 %v4502_v10  ;;  %v4561_v22 = vld [vmem:[%s5455_s2 + $0x54] ss:$8 sps:$4 sm:$0xff]   ;;  %v3942_v23 = vld [vmem:[%s5455_s2 + $0xd0] ss:$8 sps:$4 sm:$0x3f]   ;;  %s4569_s18 = scalar_lea.vmem %s5453_s0, %s3892_s29  ;;  %s3620_s10 = sshll.u32 %s5504_s16, 9 }
  0x16   : > { %v3936_v24 = vld [vmem:[%s5455_s2 + $0xc0] ss:$8 sps:$4 sm:$0xff]   ;;  %v3938_v25 = vld [vmem:[%s5455_s2 + $0xd4] ss:$8 sps:$4 sm:$0x3f]   ;;  %v643_v29 = vsel %vm641_vm0, %v3942_v23, 0  ;;  %s5133_s13 = scalar_lea.vmem %s5454_s1, %s3620_s10  ;;  %s5156_s19 = scalar_lea.vmem %s5457_s4, %s3620_s10 }
  0x17   : > { %v4580_v26 = vld [vmem:[%s5455_s2 + $0x64] ss:$8 sps:$4 sm:$0x3f]   ;;  %v4586_v27 = vld [vmem:[%s5455_s2 + $0x50] ss:$8 sps:$4 sm:$0xff]  }
  0x18   : > { %653 = vmatpush1.bf16.msra.mxu1 %v3918_v11  ;;  %1096 = vmatpush1.bf16.msra.mxu0 %v4510_v12  ;;  %v3943_v28 = vld [vmem:[%s5455_s2 + $0x60] ss:$8 sps:$4 sm:$0x3f]   ;;  %v3948_v31 = vld [vmem:[%s5455_s2 + $0xe4] ss:$8 sps:$4 sm:$0xff]   ;;  %v3944_v32 = vld [vmem:[%s4569_s18 + $0x10] sm:$0xff]  }
  0x19   : > { %654 = vmatprep.subr.bf16.mxu1 %v3920_v13  ;;  %1097 = vmatprep.subr.bf16.mxu0 %v4520_v14  ;;  %v4598_v30 = vsel %vm641_vm0, %v3943_v28, 0  ;;  %v3945_v33 = vld [vmem:[%s4569_s18] sm:$0xff]   ;;  %v3954_v35 = vld [vmem:[%s5455_s2 + $0xf4] ss:$8 sps:$4 sm:$0xff]   ;;  %v3952_v36 = vld [vmem:[%s5455_s2 + $0xf0] ss:$8 sps:$4 sm:$0xff]  }
  0x1a   : > { %v3946_v34 = vld [vmem:[%s5455_s2 + $0xe0] ss:$8 sps:$4 sm:$0xff]   ;;  %v3959_v37 = vld [vmem:[%s5455_s2 + $0x104] ss:$8 sps:$4 sm:$0xff]   ;;  %v3949_v38 = vld [vmem:[%s4569_s18 + $0x18] sm:$0xff]  }
  0x1b   : > { %v3950_v39 = vld [vmem:[%s4569_s18 + $0x8] sm:$0xff]   ;;  %v3964_v41 = vld [vmem:[%s5455_s2 + $0x114] ss:$8 sps:$4 sm:$0xff]   ;;  %v3962_v42 = vld [vmem:[%s5455_s2 + $0x110] ss:$8 sps:$4 sm:$0xff]  }
  0x1c   : > { %655 = vmatpush1.bf16.msra.mxu1 %v3924_v15  ;;  %1098 = vmatpush1.bf16.msra.mxu0 %v4533_v16  ;;  %v3957_v40 = vld [vmem:[%s5455_s2 + $0x100] ss:$8 sps:$4 sm:$0xff]   ;;  %v3970_v43 = vld [vmem:[%s5455_s2 + $0x124] ss:$8 sps:$4 sm:$0xff]   ;;  %v3975_v46 = vld [vmem:[%s5455_s2 + $0x134] ss:$8 sps:$4 sm:$0xff]  }
  0x1d   : > { %656 = vmatprep.subr.bf16.mxu1 %v3926_v17  ;;  %1099 = vmatprep.subr.bf16.mxu0 %v4542_v18  ;;  %v3951_v44 = vld [vmem:[%s4569_s18 + $0x20] sm:$0xff]   ;;  %v3973_v49 = vld [vmem:[%s5455_s2 + $0x130] ss:$8 sps:$4 sm:$0xff]   ;;  %v3955_v50 = vld [vmem:[%s4569_s18 + $0x28] sm:$0xff]  }
  0x1e   : > { %v3968_v45 = vld [vmem:[%s5455_s2 + $0x120] ss:$8 sps:$4 sm:$0xff]   ;;  %v3978_v47 = vld [vmem:[%s5455_s2 + $0x144] ss:$8 sps:$4 sm:$0x3f]   ;;  %v3956_v52 = vld [vmem:[%s4569_s18 + $0x30] sm:$0xff]  }
  0x1f   : > { %v3980_v48 = vld [vmem:[%s5455_s2 + $0x140] ss:$8 sps:$4 sm:$0x3f]   ;;  %v3960_v53 = vld [vmem:[%s4569_s18 + $0x38] sm:$0xff]   ;;  %v3966_v56 = vld [vmem:[%s4569_s18 + $0x50] sm:$0xff]  }
  0x20   : > { %657 = vmatpush1.bf16.msra.mxu1 %v3930_v19  ;;  %1100 = vmatpush1.bf16.msra.mxu0 %v4551_v20  ;;  %v1848_v51 = vsel %vm641_vm0, %v3980_v48, 0  ;;  %v3961_v54 = vld [vmem:[%s4569_s18 + $0x40] sm:$0xff]   ;;  %v3965_v55 = vld [vmem:[%s4569_s18 + $0x48] sm:$0xff]   ;;  %v3967_v57 = vld [vmem:[%s4569_s18 + $0x58] sm:$0xff]  }
  0x21   : > { %658 = vmatprep.subr.bf16.mxu1 %v3932_v21  ;;  %1101 = vmatprep.subr.bf16.mxu0 %v4561_v22  ;;  %v3971_v58 = vld [vmem:[%s4569_s18 + $0x60] sm:$0xff]   ;;  %v3972_v59 = vld [vmem:[%s4569_s18 + $0x68] sm:$0xff]   ;;  %v3976_v60 = vld [vmem:[%s4569_s18 + $0x70] sm:$0xff]  }
  0x22   : > { %v3977_v61 = vld [vmem:[%s4569_s18 + $0x78] sm:$0xff]   ;;  %v4733_v62 = vld [vmem:[%s4569_s18 + $0x80] sm:$0xff]   ;;  %v4741_v63 = vld [vmem:[%s4569_s18 + $0x88] sm:$0xff]  }
  0x23   : > { %v4749_v0 = vld [vmem:[%s4569_s18 + $0x90] sm:$0xff]   ;;  %v4758_v3 = vld [vmem:[%s4569_s18 + $0x98] sm:$0xff]   ;;  %v4767_v5 = vld [vmem:[%s4569_s18 + $0xa0] sm:$0xff]  }
  0x24   : > { %659 = vmatpush1.bf16.msra.mxu1 %v3936_v24  ;;  %1102 = vmatpush1.bf16.msra.mxu0 %v4586_v27  ;;  %v4776_v7 = vld [vmem:[%s4569_s18 + $0xa8] sm:$0xff]   ;;  %v4785_v9 = vld [vmem:[%s4569_s18 + $0xb0] sm:$0xff]   ;;  %v4794_v11 = vld [vmem:[%s4569_s18 + $0xb8] sm:$0xff]  }
  0x25   : > { %3379 = vmatprep.subr.msk.bf16.mxu1 %vm641_vm0, %v3938_v25  ;;  %3428 = vmatprep.subr.msk.bf16.mxu0 %vm641_vm0, %v4580_v26  ;;  %v4803_v13 = vld [vmem:[%s4569_s18 + $0xc0] sm:$0xff]   ;;  %v4812_v15 = vld [vmem:[%s4569_s18 + $0xc8] sm:$0xff]   ;;  %v4821_v17 = vld [vmem:[%s4569_s18 + $0xd0] sm:$0xff]  }
  0x26   : > { %v4830_v19 = vld [vmem:[%s4569_s18 + $0xd8] sm:$0xff]   ;;  %v4839_v21 = vld [vmem:[%s4569_s18 + $0xe0] sm:$0xff]   ;;  %v4852_v25 = vld [vmem:[%s4569_s18 + $0xe8] sm:$0xff]  }
  0x28   : > { %661 = vmatpush1.bf16.msra.mxu1 %v643_v29  ;;  %1104 = vmatpush1.bf16.msra.mxu0 %v4598_v30 }
  0x29   : > { %3622 = vmatprep.subr.bf16.mxu1 %v4463_v1  ;;  %1853 = vmatprep.subr.bf16.mxu0 %v3948_v31  ;;  %v3984_v1 = vld [vmem:[%s4569_s18 + $0x20] sm:$0xff]   ;;  %v4869_v31 = vld [vmem:[%s4569_s18 + $0xf0] sm:$0xff]  }
  0x2b   : > { %3380 = vmatmul.mubr.msk.bf16.vlgmr.msra.gmra.mrb[0].mxu1 %vm544_vm1, %v3944_v32  ;;  %3429 = vmatmul.mubr.msk.bf16.vlgmr.msra.gmra.mrb[0].mxu0 %vm544_vm1, %v3945_v33 }
  0x2c   : > { %3629 = vmatpush1.bf16.msra.mxu1 %v4473_v4  ;;  %1854 = vmatpush1.bf16.msra.mxu0 %v3946_v34  ;;  %v3986_v4 = vld [vmem:[%s4569_s18 + $0x28] sm:$0xff]  }
  0x2d   : > { %690 = vmatprep.mubr.bf16.mxu1 %v5458_v2  ;;  %1133 = vmatprep.mubr.bf16.mxu0 %v5458_v2 }
  0x2e   : > { %1855 = vmatprep.subr.bf16.mxu0 %v3954_v35  ;;  %3623 = vmatprep.subr.bf16.mxu1 %v4483_v6  ;;  %v3988_v6 = vld [vmem:[%s4569_s18 + $0x30] sm:$0xff]  }
  0x30   : > { %1856 = vmatpush1.bf16.msra.mxu0 %v3952_v36  ;;  %3630 = vmatpush1.bf16.msra.mxu1 %v4491_v8  ;;  %v3990_v8 = vld [vmem:[%s4569_s18 + $0x38] sm:$0xff]  }
  0x31   : > { %1857 = vmatprep.subr.bf16.mxu0 %v3959_v37  ;;  %3624 = vmatprep.subr.bf16.mxu1 %v4502_v10  ;;  %v3992_v10 = vld [vmem:[%s4569_s18 + $0x40] sm:$0xff]   ;;  %v4886_v37 = vld [vmem:[%s4569_s18 + $0xf8] sm:$0xff]  }
  0x33   : > { %3381 = vmatmul.mubr.msk.bf16.gmra.mrb[4].mxu1 %vm544_vm1, %v3949_v38  ;;  %3430 = vmatmul.mubr.msk.bf16.gmra.mrb[4].mxu0 %vm544_vm1, %v3950_v39 }
  0x34   : > { %700 = vmatprep.mubr.bf16.mxu1 %v5458_v2  ;;  %1143 = vmatprep.mubr.bf16.mxu0 %v5458_v2 }
  0x35   : > { %1858 = vmatpush1.bf16.msra.mxu0 %v3957_v40  ;;  %3631 = vmatpush1.bf16.msra.mxu1 %v4510_v12  ;;  %v3994_v12 = vld [vmem:[%s4569_s18 + $0x48] sm:$0xff]  }
  0x36   : > { %1859 = vmatprep.subr.bf16.mxu0 %v3964_v41  ;;  %3625 = vmatprep.subr.bf16.mxu1 %v4520_v14  ;;  %v3996_v14 = vld [vmem:[%s4569_s18 + $0x50] sm:$0xff]  }
  0x39   : > { %1860 = vmatpush1.bf16.msra.mxu0 %v3962_v42  ;;  %3632 = vmatpush1.bf16.msra.mxu1 %v4533_v16  ;;  %v3998_v16 = vld [vmem:[%s4569_s18 + $0x58] sm:$0xff]  }
  0x3a   : > { %1861 = vmatprep.subr.bf16.mxu0 %v3970_v43  ;;  %3626 = vmatprep.subr.bf16.mxu1 %v4542_v18  ;;  %v4000_v18 = vld [vmem:[%s4569_s18 + $0x60] sm:$0xff]  }
  0x3b   : > { %3382 = vmatmul.mubr.msk.bf16.gmra.mrb[8].mxu1 %vm544_vm1, %v3951_v44  ;;  %3431 = vmatmul.mubr.msk.bf16.gmra.mrb[8].mxu0 %vm544_vm1, %v3944_v32  ;;  %v4008_v32 = vld [vmem:[%s4569_s18 + $0x80] sm:$0xff]  }
  0x3c   : > { %710 = vmatprep.mubr.bf16.mxu1 %v5458_v2  ;;  %1153 = vmatprep.mubr.bf16.mxu0 %v5458_v2  ;;  %v4011_v43 = vld [vmem:[%s4569_s18 + $0x100] sm:$0xff]  }
  0x3d   : > { %1862 = vmatpush1.bf16.msra.mxu0 %v3968_v45  ;;  %3633 = vmatpush1.bf16.msra.mxu1 %v4551_v20  ;;  %v4002_v20 = vld [vmem:[%s4569_s18 + $0x68] sm:$0xff]  }
  0x3e   : > { %1863 = vmatprep.subr.bf16.mxu0 %v3975_v46  ;;  %3627 = vmatprep.subr.bf16.mxu1 %v4561_v22  ;;  %v4004_v22 = vld [vmem:[%s4569_s18 + $0x70] sm:$0xff]  }
  0x41   : > { %1864 = vmatpush1.bf16.msra.mxu0 %v3973_v49  ;;  %3634 = vmatpush1.bf16.msra.mxu1 %v4586_v27  ;;  %v4013_v49 = vld [vmem:[%s4569_s18 + $0x108] sm:$0xff]  }
  0x42   : > { %3521 = vmatprep.subr.msk.bf16.mxu0 %vm641_vm0, %v3978_v47  ;;  %3628 = vmatprep.subr.msk.bf16.mxu1 %vm641_vm0, %v4580_v26  ;;  %v4006_v26 = vld [vmem:[%s4569_s18 + $0x78] sm:$0xff]  }
  0x43   : > { %3383 = vmatmul.mubr.msk.bf16.gmra.mrb[12].mxu1 %vm544_vm1, %v3955_v50  ;;  %3432 = vmatmul.mubr.msk.bf16.gmra.mrb[12].mxu0 %vm544_vm1, %v3949_v38  ;;  %v4010_v38 = vld [vmem:[%s4569_s18 + $0x88] sm:$0xff]  }
  0x44   : > { %720 = vmatprep.mubr.bf16.mxu1 %v5458_v2  ;;  %1163 = vmatprep.mubr.bf16.mxu0 %v5458_v2 }
  0x45   : > { %1866 = vmatpush1.bf16.msra.mxu0 %v1848_v51  ;;  %3635 = vmatpush1.bf16.msra.mxu1 %v4598_v30 }
  0x4b   : > { %3384 = vmatmul.mubr.msk.bf16.gmra.mrb[16].mxu1 %vm544_vm1, %v3956_v52  ;;  %3433 = vmatmul.mubr.msk.bf16.gmra.mrb[16].mxu0 %vm544_vm1, %v3951_v44  ;;  %v4012_v44 = vld [vmem:[%s4569_s18 + $0x90] sm:$0xff]  }
  0x4c   : > { %730 = vmatprep.mubr.bf16.mxu1 %v5458_v2  ;;  %1173 = vmatprep.mubr.bf16.mxu0 %v5458_v2 }
  0x53   : > { %3385 = vmatmul.mubr.msk.bf16.gmra.mrb[20].mxu1 %vm544_vm1, %v3960_v53  ;;  %3434 = vmatmul.mubr.msk.bf16.gmra.mrb[20].mxu0 %vm544_vm1, %v3955_v50  ;;  %v4014_v50 = vld [vmem:[%s4569_s18 + $0x98] sm:$0xff]  }
  0x54   : > { %740 = vmatprep.mubr.bf16.mxu1 %v5458_v2  ;;  %1183 = vmatprep.mubr.bf16.mxu0 %v5458_v2 }
  0x5b   : > { %3386 = vmatmul.mubr.msk.bf16.gmra.mrb[24].mxu1 %vm544_vm1, %v3961_v54  ;;  %3435 = vmatmul.mubr.msk.bf16.gmra.mrb[24].mxu0 %vm544_vm1, %v3956_v52 }
  0x5c   : > { %750 = vmatprep.mubr.bf16.mxu1 %v5458_v2  ;;  %1193 = vmatprep.mubr.bf16.mxu0 %v5458_v2 }
  0x63   : > { %3387 = vmatmul.mubr.msk.bf16.gmra.mrb[28].mxu1 %vm544_vm1, %v3965_v55  ;;  %3436 = vmatmul.mubr.msk.bf16.gmra.mrb[28].mxu0 %vm544_vm1, %v3960_v53 }
  0x64   : > { %760 = vmatprep.mubr.bf16.mxu1 %v5458_v2  ;;  %1203 = vmatprep.mubr.bf16.mxu0 %v5458_v2 }
  0x6b   : > { %3388 = vmatmul.mubr.msk.bf16.gmra.mrb[32].mxu1 %vm544_vm1, %v3966_v56  ;;  %3437 = vmatmul.mubr.msk.bf16.gmra.mrb[32].mxu0 %vm544_vm1, %v3961_v54 }
  0x6c   : > { %770 = vmatprep.mubr.bf16.mxu1 %v5458_v2  ;;  %1213 = vmatprep.mubr.bf16.mxu0 %v5458_v2 }
  0x73   : > { %3389 = vmatmul.mubr.msk.bf16.gmra.mrb[36].mxu1 %vm544_vm1, %v3967_v57  ;;  %3438 = vmatmul.mubr.msk.bf16.gmra.mrb[36].mxu0 %vm544_vm1, %v3965_v55  ;;  %v4015_v55 = vld [vmem:[%s4569_s18 + $0xa0] sm:$0xff]  }
  0x74   : > { %780 = vmatprep.mubr.bf16.mxu1 %v5458_v2  ;;  %1223 = vmatprep.mubr.bf16.mxu0 %v5458_v2 }
  0x7b   : > { %3390 = vmatmul.mubr.msk.bf16.gmra.mrb[40].mxu1 %vm544_vm1, %v3971_v58  ;;  %3439 = vmatmul.mubr.msk.bf16.gmra.mrb[40].mxu0 %vm544_vm1, %v3966_v56 }
  0x7c   : > { %790 = vmatprep.mubr.bf16.mxu1 %v5458_v2  ;;  %1233 = vmatprep.mubr.bf16.mxu0 %v5458_v2 }
  0x83   : > { %3391 = vmatmul.mubr.msk.bf16.gmra.mrb[44].mxu1 %vm544_vm1, %v3972_v59  ;;  %3440 = vmatmul.mubr.msk.bf16.gmra.mrb[44].mxu0 %vm544_vm1, %v3967_v57 }
  0x84   : > { %800 = vmatprep.mubr.bf16.mxu1 %v5458_v2  ;;  %1243 = vmatprep.mubr.bf16.mxu0 %v5458_v2 }
  0x8b   : > { %3392 = vmatmul.mubr.msk.bf16.gmra.mrb[48].mxu1 %vm544_vm1, %v3976_v60  ;;  %3441 = vmatmul.mubr.msk.bf16.gmra.mrb[48].mxu0 %vm544_vm1, %v3971_v58 }
  0x8c   : > { %810 = vmatprep.mubr.bf16.mxu1 %v5458_v2  ;;  %1253 = vmatprep.mubr.bf16.mxu0 %v5458_v2 }
  0x93   : > { %3393 = vmatmul.mubr.msk.bf16.gmra.mrb[52].mxu1 %vm544_vm1, %v3977_v61  ;;  %3442 = vmatmul.mubr.msk.bf16.gmra.mrb[52].mxu0 %vm544_vm1, %v3972_v59 }
  0x94   : > { %820 = vmatprep.mubr.bf16.mxu1 %v5458_v2  ;;  %1263 = vmatprep.mubr.bf16.mxu0 %v5458_v2 }
  0x9b   : > { %3394 = vmatmul.mubr.msk.bf16.gmra.mrb[56].mxu1 %vm544_vm1, %v4733_v62  ;;  %3443 = vmatmul.mubr.msk.bf16.gmra.mrb[56].mxu0 %vm544_vm1, %v3976_v60  ;;  %v4016_v60 = vld [vmem:[%s4569_s18 + $0xa8] sm:$0xff]  }
  0x9c   : > { %830 = vmatprep.mubr.bf16.mxu1 %v5458_v2  ;;  %1273 = vmatprep.mubr.bf16.mxu0 %v5458_v2 }
  0xa3   : > { %3395 = vmatmul.mubr.msk.bf16.gmra.mrb[60].mxu1 %vm544_vm1, %v4741_v63  ;;  %3444 = vmatmul.mubr.msk.bf16.gmra.mrb[60].mxu0 %vm544_vm1, %v3977_v61 }
  0xa4   : > { %840 = vmatprep.mubr.bf16.mxu1 %v5458_v2  ;;  %1885 = vmatprep.mubr.bf16.mxu0 %v5458_v2 }
  0xab   : > { %3396 = vmatmul.mubr.msk.bf16.gmra.mrb[64].mxu1 %vm544_vm1, %v4749_v0  ;;  %3522 = vmatmul.mubr.msk.bf16.vlgmr.msra.gmra.mrb[0].mxu0 %vm544_vm1, %v3984_v1 }
  0xac   : > { %850 = vmatprep.mubr.bf16.mxu1 %v5458_v2  ;;  %1895 = vmatprep.mubr.bf16.mxu0 %v5458_v2 }
  0xb3   : > { %3397 = vmatmul.mubr.msk.bf16.gmra.mrb[68].mxu1 %vm544_vm1, %v4758_v3  ;;  %3523 = vmatmul.mubr.msk.bf16.gmra.mrb[4].mxu0 %vm544_vm1, %v3986_v4 }
  0xb4   : > { %860 = vmatprep.mubr.bf16.mxu1 %v5458_v2  ;;  %1905 = vmatprep.mubr.bf16.mxu0 %v5458_v2 }
  0xbb   : > { %3398 = vmatmul.mubr.msk.bf16.gmra.mrb[72].mxu1 %vm544_vm1, %v4767_v5  ;;  %3524 = vmatmul.mubr.msk.bf16.gmra.mrb[8].mxu0 %vm544_vm1, %v3988_v6  ;;  %v4017_v6 = vld [vmem:[%s4569_s18 + $0xb0] sm:$0xff]  }
  0xbc   : > { %870 = vmatprep.mubr.bf16.mxu1 %v5458_v2  ;;  %1915 = vmatprep.mubr.bf16.mxu0 %v5458_v2 }
  0xc3   : > { %3399 = vmatmul.mubr.msk.bf16.gmra.mrb[76].mxu1 %vm544_vm1, %v4776_v7  ;;  %3525 = vmatmul.mubr.msk.bf16.gmra.mrb[12].mxu0 %vm544_vm1, %v3990_v8 }
  0xc4   : > { %880 = vmatprep.mubr.bf16.mxu1 %v5458_v2  ;;  %1925 = vmatprep.mubr.bf16.mxu0 %v5458_v2 }
  0xcb   : > { %3400 = vmatmul.mubr.msk.bf16.gmra.mrb[80].mxu1 %vm544_vm1, %v4785_v9  ;;  %3526 = vmatmul.mubr.msk.bf16.gmra.mrb[16].mxu0 %vm544_vm1, %v3992_v10 }
  0xcc   : > { %890 = vmatprep.mubr.bf16.mxu1 %v5458_v2  ;;  %1935 = vmatprep.mubr.bf16.mxu0 %v5458_v2 }
  0xd3   : > { %3401 = vmatmul.mubr.msk.bf16.gmra.mrb[84].mxu1 %vm544_vm1, %v4794_v11  ;;  %3527 = vmatmul.mubr.msk.bf16.gmra.mrb[20].mxu0 %vm544_vm1, %v3994_v12 }
  0xd4   : > { %900 = vmatprep.mubr.bf16.mxu1 %v5458_v2  ;;  %1945 = vmatprep.mubr.bf16.mxu0 %v5458_v2 }
  0xdb   : > { %3402 = vmatmul.mubr.msk.bf16.gmra.mrb[88].mxu1 %vm544_vm1, %v4803_v13  ;;  %3528 = vmatmul.mubr.msk.bf16.gmra.mrb[24].mxu0 %vm544_vm1, %v3996_v14  ;;  %v4018_v14 = vld [vmem:[%s4569_s18 + $0xb8] sm:$0xff]  }
  0xdc   : > { %910 = vmatprep.mubr.bf16.mxu1 %v5458_v2  ;;  %1955 = vmatprep.mubr.bf16.mxu0 %v5458_v2 }
  0xe3   : > { %3403 = vmatmul.mubr.msk.bf16.gmra.mrb[92].mxu1 %vm544_vm1, %v4812_v15  ;;  %3529 = vmatmul.mubr.msk.bf16.gmra.mrb[28].mxu0 %vm544_vm1, %v3998_v16 }
  0xe4   : > { %920 = vmatprep.mubr.bf16.mxu1 %v5458_v2  ;;  %1965 = vmatprep.mubr.bf16.mxu0 %v5458_v2 }
  0xeb   : > { %3404 = vmatmul.mubr.msk.bf16.gmra.mrb[96].mxu1 %vm544_vm1, %v4821_v17  ;;  %3530 = vmatmul.mubr.msk.bf16.gmra.mrb[32].mxu0 %vm544_vm1, %v4000_v18 }
  0xec   : > { %930 = vmatprep.mubr.bf16.mxu1 %v5458_v2  ;;  %1975 = vmatprep.mubr.bf16.mxu0 %v5458_v2 }
  0xf3   : > { %3405 = vmatmul.mubr.msk.bf16.gmra.mrb[100].mxu1 %vm544_vm1, %v4830_v19  ;;  %3531 = vmatmul.mubr.msk.bf16.gmra.mrb[36].mxu0 %vm544_vm1, %v4002_v20 }
  0xf4   : > { %940 = vmatprep.mubr.bf16.mxu1 %v5458_v2  ;;  %1985 = vmatprep.mubr.bf16.mxu0 %v5458_v2 }
  0xfb   : > { %3406 = vmatmul.mubr.msk.bf16.gmra.mrb[104].mxu1 %vm544_vm1, %v4839_v21  ;;  %3532 = vmatmul.mubr.msk.bf16.gmra.mrb[40].mxu0 %vm544_vm1, %v4004_v22  ;;  %v4019_v22 = vld [vmem:[%s4569_s18 + $0xc0] sm:$0xff]  }
  0xfc   : > { %950 = vmatprep.mubr.bf16.mxu1 %v5458_v2  ;;  %1995 = vmatprep.mubr.bf16.mxu0 %v5458_v2 }
  0xfe   : > { %v4847_v23 = vpop.f32.mrb[0].mxu1 }
  0xff   : > { %v4849_v24 = vpop.f32.mrb[1].mxu1 }
 0x100   : > { %v4855_v27 = vpop.f32.mrb[2].mxu1 }
 0x101   : > { %v4857_v28 = vpop.f32.mrb[3].mxu1 }
 0x103   : > { %3407 = vmatmul.mubr.msk.bf16.gmra.mrb[108].mxu1 %vm544_vm1, %v4852_v25  ;;  %3533 = vmatmul.mubr.msk.bf16.gmra.mrb[44].mxu0 %vm544_vm1, %v4006_v26 }
 0x104   : > { %960 = vmatprep.mubr.bf16.mxu1 %v5458_v2  ;;  %2005 = vmatprep.mubr.bf16.mxu0 %v5458_v2 }
 0x106   : > { %v4864_v29 = vpop.f32.mrb[4].mxu1 }
 0x107   : > { %v4866_v30 = vpop.f32.mrb[5].mxu1 }
 0x108   : > { %v4872_v33 = vpop.f32.mrb[6].mxu1 }
 0x109   : > { %v4874_v34 = vpop.f32.mrb[7].mxu1 }
 0x10b   : > { %3408 = vmatmul.mubr.msk.bf16.gmra.mrb[112].mxu1 %vm544_vm1, %v4869_v31  ;;  %3534 = vmatmul.mubr.msk.bf16.gmra.mrb[48].mxu0 %vm544_vm1, %v4008_v32 }
 0x10c   : > { %970 = vmatprep.mubr.bf16.mxu1 %v5458_v2  ;;  %2015 = vmatprep.mubr.bf16.mxu0 %v5458_v2 }
 0x10e   : > { %v4881_v35 = vpop.f32.mrb[8].mxu1 }
 0x10f   : > { %v4883_v36 = vpop.f32.mrb[9].mxu1 }
 0x110   : > { %v4889_v39 = vpop.f32.mrb[10].mxu1 }
 0x111   : > { %v4891_v40 = vpop.f32.mrb[11].mxu1 }
 0x113   : > { %3409 = vmatmul.mubr.msk.bf16.gmra.mrb[116].mxu1 %vm544_vm1, %v4886_v37  ;;  %3535 = vmatmul.mubr.msk.bf16.gmra.mrb[52].mxu0 %vm544_vm1, %v4010_v38 }
 0x114   : > { %980 = vmatprep.mubr.bf16.mxu1 %v5458_v2  ;;  %2025 = vmatprep.mubr.bf16.mxu0 %v5458_v2 }
 0x116   : > { %v4898_v41 = vpop.f32.mrb[12].mxu1 }
 0x117   : > { %v4900_v42 = vpop.f32.mrb[13].mxu1 }
 0x118   : > { %v4904_v45 = vpop.f32.mrb[14].mxu1 }
 0x119   : > { %v4906_v46 = vpop.f32.mrb[15].mxu1 }
 0x11b   : > { %3410 = vmatmul.mubr.msk.bf16.gmra.mrb[120].mxu1 %vm544_vm1, %v4011_v43  ;;  %3536 = vmatmul.mubr.msk.bf16.gmra.mrb[56].mxu0 %vm544_vm1, %v4012_v44  ;;  %v4020_v43 = vld [vmem:[%s4569_s18 + $0xc8] sm:$0xff]  }
 0x11c   : > { %990 = vmatprep.mubr.bf16.mxu1 %v5458_v2  ;;  %2035 = vmatprep.mubr.bf16.mxu0 %v5458_v2 }
 0x11e   : > { %v4912_v47 = vpop.f32.mrb[16].mxu1 }
 0x11f   : > { %v4914_v48 = vpop.f32.mrb[17].mxu1 }
 0x120   : > { %v4918_v51 = vpop.f32.mrb[18].mxu1 }
 0x121   : > { %v4920_v52 = vpop.f32.mrb[19].mxu1 }
 0x123   : > { %3411 = vmatmul.mubr.msk.bf16.gmra.mrb[124].mxu1 %vm544_vm1, %v4013_v49  ;;  %3537 = vmatmul.mubr.msk.bf16.gmra.mrb[60].mxu0 %vm544_vm1, %v4014_v50 }
 0x124   : > { %1283 = vmatprep.mubr.bf16.mxu1 %v5458_v2  ;;  %2045 = vmatprep.mubr.bf16.mxu0 %v5458_v2 }
 0x126   : > { %v4926_v53 = vpop.f32.mrb[20].mxu1 }
 0x127   : > { %v4928_v54 = vpop.f32.mrb[21].mxu1 }
 0x128   : > { %v4931_v56 = vpop.f32.mrb[22].mxu1 }
 0x129   : > { %v4933_v57 = vpop.f32.mrb[23].mxu1 }
 0x12b   : > { %3445 = vmatmul.mubr.msk.bf16.vlgmr.msra.gmra.mrb[64].mxu1 %vm544_vm1, %v4733_v62  ;;  %3538 = vmatmul.mubr.msk.bf16.gmra.mrb[64].mxu0 %vm544_vm1, %v4015_v55  ;;  %v4021_v55 = vld [vmem:[%s4569_s18 + $0xd0] sm:$0xff]  }
 0x12c   : > { %1293 = vmatprep.mubr.bf16.mxu1 %v5458_v2  ;;  %2055 = vmatprep.mubr.bf16.mxu0 %v5458_v2 }
 0x12e   : > { %v4940_v58 = vpop.f32.mrb[24].mxu1 }
 0x12f   : > { %v4942_v59 = vpop.f32.mrb[25].mxu1 }
 0x130   : > { %v4945_v61 = vpop.f32.mrb[26].mxu1 }
 0x131   : > { %v4947_v1 = vpop.f32.mrb[27].mxu1 }
 0x133   : > { %3446 = vmatmul.mubr.msk.bf16.gmra.mrb[68].mxu1 %vm544_vm1, %v4741_v63  ;;  %3539 = vmatmul.mubr.msk.bf16.gmra.mrb[68].mxu0 %vm544_vm1, %v4016_v60 }
 0x134   : > { %1303 = vmatprep.mubr.bf16.mxu1 %v5458_v2  ;;  %2065 = vmatprep.mubr.bf16.mxu0 %v5458_v2 }
 0x136   : > { %v4954_v62 = vpop.f32.mrb[28].mxu1 }
 0x137   : > { %v4956_v4 = vpop.f32.mrb[29].mxu1 }
 0x138   : > { %v4959_v8 = vpop.f32.mrb[30].mxu1 }
 0x139   : > { %v4961_v10 = vpop.f32.mrb[31].mxu1 }
 0x13b   : > { %3447 = vmatmul.mubr.msk.bf16.gmra.mrb[72].mxu1 %vm544_vm1, %v4749_v0  ;;  %3540 = vmatmul.mubr.msk.bf16.gmra.mrb[72].mxu0 %vm544_vm1, %v4017_v6 }
 0x13c   : > { %1313 = vmatprep.mubr.bf16.mxu1 %v5458_v2  ;;  %2075 = vmatprep.mubr.bf16.mxu0 %v5458_v2 }
 0x13e   : > { %v4968_v63 = vpop.f32.mrb[32].mxu1 }
 0x13f   : > { %v4970_v12 = vpop.f32.mrb[33].mxu1 }
 0x140   : > { %v4973_v16 = vpop.f32.mrb[34].mxu1 }
 0x141   : > { %v4975_v18 = vpop.f32.mrb[35].mxu1 }
 0x143   : > { %3448 = vmatmul.mubr.msk.bf16.gmra.mrb[76].mxu1 %vm544_vm1, %v4758_v3  ;;  %3541 = vmatmul.mubr.msk.bf16.gmra.mrb[76].mxu0 %vm544_vm1, %v4018_v14 }
 0x144   : > { %1323 = vmatprep.mubr.bf16.mxu1 %v5458_v2  ;;  %2085 = vmatprep.mubr.bf16.mxu0 %v5458_v2 }
 0x146   : > { %v4982_v0 = vpop.f32.mrb[36].mxu1 }
 0x147   : > { %v4984_v20 = vpop.f32.mrb[37].mxu1 }
 0x148   : > { %v4987_v26 = vpop.f32.mrb[38].mxu1 }
 0x149   : > { %v4989_v32 = vpop.f32.mrb[39].mxu1 }
 0x14b   : > { %3449 = vmatmul.mubr.msk.bf16.gmra.mrb[80].mxu1 %vm544_vm1, %v4767_v5  ;;  %3542 = vmatmul.mubr.msk.bf16.gmra.mrb[80].mxu0 %vm544_vm1, %v4019_v22  ;;  %v4022_v22 = vld [vmem:[%s4569_s18 + $0xd8] sm:$0xff]  }
 0x14c   : > { %1333 = vmatprep.mubr.bf16.mxu1 %v5458_v2  ;;  %2095 = vmatprep.mubr.bf16.mxu0 %v5458_v2 }
 0x14e   : > { %v4996_v3 = vpop.f32.mrb[40].mxu1 }
 0x14f   : > { %v4998_v38 = vpop.f32.mrb[41].mxu1 }
 0x150   : > { %v5001_v44 = vpop.f32.mrb[42].mxu1 }
 0x151   : > { %v5003_v49 = vpop.f32.mrb[43].mxu1 }
 0x152   : > { %5460 = vst [vmem:[#allocation2_spill] sm:$0xff] %v5003_v49 }
 0x153   : > { %3450 = vmatmul.mubr.msk.bf16.gmra.mrb[84].mxu1 %vm544_vm1, %v4776_v7  ;;  %3543 = vmatmul.mubr.msk.bf16.gmra.mrb[84].mxu0 %vm544_vm1, %v4020_v43 }
 0x154   : > { %1343 = vmatprep.mubr.bf16.mxu1 %v5458_v2  ;;  %2105 = vmatprep.mubr.bf16.mxu0 %v5458_v2 }
 0x156   : > { %v5010_v5 = vpop.f32.mrb[44].mxu1 }
 0x157   : > { %5461 = vst [vmem:[#allocation3_spill] sm:$0xff] %v5010_v5  ;;  %v5012_v50 = vpop.f32.mrb[45].mxu1 }
 0x158   : > { %5462 = vst [vmem:[#allocation4_spill] sm:$0xff] %v5012_v50  ;;  %v5015_v60 = vpop.f32.mrb[46].mxu1 }
 0x159   : > { %5463 = vst [vmem:[#allocation5_spill] sm:$0xff] %v5015_v60  ;;  %v5017_v6 = vpop.f32.mrb[47].mxu1 }
 0x15a   : > { %5464 = vst [vmem:[#allocation6_spill] sm:$0xff] %v5017_v6 }
 0x15b   : > { %3451 = vmatmul.mubr.msk.bf16.gmra.mrb[88].mxu1 %vm544_vm1, %v4785_v9  ;;  %3544 = vmatmul.mubr.msk.bf16.gmra.mrb[88].mxu0 %vm544_vm1, %v4021_v55 }
 0x15c   : > { %1353 = vmatprep.mubr.bf16.mxu1 %v5458_v2  ;;  %2115 = vmatprep.mubr.bf16.mxu0 %v5458_v2 }
 0x15e   : > { %v5024_v7 = vpop.f32.mrb[48].mxu1 }
 0x15f   : > { %5465 = vst [vmem:[#allocation7_spill] sm:$0xff] %v5024_v7  ;;  %v5026_v14 = vpop.f32.mrb[49].mxu1 }
 0x160   : > { %5466 = vst [vmem:[#allocation8_spill] sm:$0xff] %v5026_v14  ;;  %v5029_v43 = vpop.f32.mrb[50].mxu1  ;;  %v4023_v14 = vld [vmem:[%s4569_s18 + $0xe0] sm:$0xff]  }
 0x161   : > { %5467 = vst [vmem:[#allocation9_spill] sm:$0xff] %v5029_v43  ;;  %v5031_v60 = vpop.f32.mrb[51].mxu1 }
 0x162   : > { %5468 = vst [vmem:[#allocation10_spill] sm:$0xff] %v5031_v60 }
 0x163   : > { %3452 = vmatmul.mubr.msk.bf16.gmra.mrb[92].mxu1 %vm544_vm1, %v4794_v11  ;;  %3545 = vmatmul.mubr.msk.bf16.gmra.mrb[92].mxu0 %vm544_vm1, %v4022_v22 }
 0x164   : > { %1363 = vmatprep.mubr.bf16.mxu1 %v5458_v2  ;;  %2125 = vmatprep.mubr.bf16.mxu0 %v5458_v2 }
 0x166   : > { %v5038_v9 = vpop.f32.mrb[52].mxu1 }
 0x167   : > { %5469 = vst [vmem:[#allocation11_spill] sm:$0xff] %v5038_v9  ;;  %v5040_v55 = vpop.f32.mrb[53].mxu1 }
 0x168   : > { %5470 = vst [vmem:[#allocation12_spill] sm:$0xff] %v5040_v55  ;;  %v5043_v7 = vpop.f32.mrb[54].mxu1  ;;  %v4024_v55 = vld [vmem:[%s4569_s18 + $0xe8] sm:$0xff]  }
 0x169   : > { %5471 = vst [vmem:[#allocation13_spill] sm:$0xff] %v5043_v7  ;;  %v5045_v43 = vpop.f32.mrb[55].mxu1 }
 0x16a   : > { %5472 = vst [vmem:[#allocation14_spill] sm:$0xff] %v5045_v43  ;;  %v2336_v43 = vlaneseq }
 0x16b   : > { %3453 = vmatmul.mubr.msk.bf16.gmra.mrb[96].mxu1 %vm544_vm1, %v4803_v13  ;;  %3546 = vmatmul.mubr.msk.bf16.gmra.mrb[96].mxu0 %vm544_vm1, %v4023_v14 }
 0x16c   : > { %1373 = vmatprep.mubr.bf16.mxu1 %v5458_v2  ;;  %2135 = vmatprep.mubr.bf16.mxu0 %v5458_v2  ;;  %v2337_v13 = vshrl.u32 %v2336_v43, 7 }
 0x16e   : > { %v5052_v11 = vpop.f32.mrb[56].mxu1  ;;  %v2338_v60 = vsub.s32 0, %v2337_v13 }
 0x16f   : > { %5473 = vst [vmem:[#allocation15_spill] sm:$0xff] %v5052_v11  ;;  %v5054_v22 = vpop.f32.mrb[57].mxu1  ;;  %v4025_v11 = vld [vmem:[%s4569_s18 + $0xf0] sm:$0xff]  }
 0x170   : > { %5474 = vst [vmem:[#allocation16_spill] sm:$0xff] %v5054_v22  ;;  %v5057_v9 = vpop.f32.mrb[58].mxu1 }
 0x171   : > { %5475 = vst [vmem:[#allocation17_spill] sm:$0xff] %v5057_v9  ;;  %v5059_v7 = vpop.f32.mrb[59].mxu1 }
 0x172   : > { %5476 = vst [vmem:[#allocation18_spill] sm:$0xff] %v5059_v7 }
 0x173   : > { %3454 = vmatmul.mubr.msk.bf16.gmra.mrb[100].mxu1 %vm544_vm1, %v4812_v15  ;;  %3547 = vmatmul.mubr.msk.bf16.gmra.mrb[100].mxu0 %vm544_vm1, %v4024_v55  ;;  %v2334_v15 = vld [vmem:[%s5456_s3] sm:$0x3] }
 0x174   : > { %1383 = vmatprep.mubr.bf16.mxu1 %v5458_v2  ;;  %2145 = vmatprep.mubr.bf16.mxu0 %v5458_v2  ;;  %v5083_v43 = vrot.slane %v2334_v15, %v2338_v60 }
 0x176   : > { %v5066_v14 = vpop.f32.mrb[60].mxu1 }
 0x177   : > { %5477 = vst [vmem:[#allocation19_spill] sm:$0xff] %v5066_v14  ;;  %v5068_v22 = vpop.f32.mrb[61].mxu1 }
 0x178   : > { %5478 = vst [vmem:[#allocation20_spill] sm:$0xff] %v5068_v22  ;;  %v5071_v9 = vpop.f32.mrb[62].mxu1  ;;  %v4026_v22 = vld [vmem:[%s4569_s18 + $0xf8] sm:$0xff]  }
 0x179   : > { %5479 = vst [vmem:[#allocation21_spill] sm:$0xff] %v5071_v9  ;;  %v5073_v7 = vpop.f32.mrb[63].mxu1 }
 0x17a   : > { %5480 = vst [vmem:[#allocation22_spill] sm:$0xff] %v5073_v7 }
 0x17b   : > { %3455 = vmatmul.mubr.msk.bf16.gmra.mrb[104].mxu1 %vm544_vm1, %v4821_v17  ;;  %3548 = vmatmul.mubr.msk.bf16.gmra.mrb[104].mxu0 %vm544_vm1, %v4025_v11  ;;  %v2342_v11 = vsub.s32 1, %v2337_v13 }
 0x17c   : > { %1393 = vmatprep.mubr.bf16.mxu1 %v5458_v2  ;;  %2155 = vmatprep.mubr.bf16.mxu0 %v5458_v2 }
 0x17e   : > { %v1887_v55 = vpop.f32.mrb[0].mxu0 }
 0x17f   : > { %v3636_v9 = vadd.f32 %v1887_v55, %v4847_v23  ;;  %v1889_v7 = vpop.f32.mrb[1].mxu0  ;;  %v5481_v23 = vmov 0  }
 0x180   : > { %v3637_v14 = vadd.f32 %v1889_v7, %v4849_v24  ;;  %v1891_v6 = vpop.f32.mrb[2].mxu0 }
 0x181   : > { %v2346_v50 = vadd.f32 %v3636_v9, %v5083_v43  ;;  %v3638_v17 = vadd.f32 %v1891_v6, %v4855_v27  ;;  %v1893_v5 = vpop.f32.mrb[3].mxu0  ;;  %v5097_v27 = vrot.slane %v2334_v15, %v2342_v11 }
 0x182   : > { %v3639_v49 = vadd.f32 %v1893_v5, %v4857_v28 }
 0x183   : > { %v3554_v2 = vmul.f32 -1.442695, %v2346_v50  ;;  %v2348_v60 = vadd.f32 %v3638_v17, %v5083_v43  ;;  %3456 = vmatmul.mubr.msk.bf16.gmra.mrb[108].mxu1 %vm544_vm1, %v4830_v19  ;;  %3549 = vmatmul.mubr.msk.bf16.gmra.mrb[108].mxu0 %vm544_vm1, %v4026_v22  ;;  %v4027_v50 = vld [vmem:[%s4569_s18 + $0x100] sm:$0xff]   ;;  %v2347_v55 = vadd.f32 %v3637_v14, %v5097_v27 }
 0x184   : > { %1403 = vmatprep.mubr.bf16.mxu1 %v5481_v23  ;;  %2165 = vmatprep.mubr.bf16.mxu0 %v5481_v23 }
 0x185   : > { %4031 = vpow2.f32 %v3554_v2  ;;  %v3555_v24 = vmul.f32 -1.442695, %v2348_v60  ;;  %v4028_v60 = vld [vmem:[%s4569_s18 + $0x108] sm:$0xff]  }
 0x186   : > { %v1897_v6 = vpop.f32.mrb[4].mxu0 }
 0x187   : > { %4033 = vpow2.f32 %v3555_v24  ;;  %v3640_v28 = vadd.f32 %v1897_v6, %v4864_v29  ;;  %v1899_v5 = vpop.f32.mrb[5].mxu0  ;;  %v2349_v29 = vadd.f32 %v3639_v49, %v5097_v27 }
 0x188   : > { %v3641_v7 = vadd.f32 %v1899_v5, %v4866_v30  ;;  %v1901_v9 = vpop.f32.mrb[6].mxu0 }
 0x189   : > { %v2350_v19 = vadd.f32 %v3640_v28, %v5083_v43  ;;  %v3642_v22 = vadd.f32 %v1901_v9, %v4872_v33  ;;  %v1903_v13 = vpop.f32.mrb[7].mxu0 }
 0x18a   : > { %v3643_v2 = vadd.f32 %v1903_v13, %v4874_v34 }
 0x18b   : > { %v3556_v15 = vmul.f32 -1.442695, %v2350_v19  ;;  %v2352_v17 = vadd.f32 %v3642_v22, %v5083_v43  ;;  %3457 = vmatmul.mubr.msk.bf16.gmra.mrb[112].mxu1 %vm544_vm1, %v4839_v21  ;;  %3550 = vmatmul.mubr.msk.bf16.gmra.mrb[112].mxu0 %vm544_vm1, %v4027_v50  ;;  %v2351_v19 = vadd.f32 %v3641_v7, %v5097_v27 }
 0x18c   : > { %1413 = vmatprep.mubr.bf16.mxu1 %v5481_v23  ;;  %2175 = vmatprep.mubr.bf16.mxu0 %v5481_v23 }
 0x18d   : > { %4035 = vpow2.f32 %v3556_v15  ;;  %v3557_v30 = vmul.f32 -1.442695, %v2352_v17  ;;  %v2922_v17 = vld [vmem:[%s5133_s13] sm:$0xff] }
 0x18e   : > { %4037 = vtanh.f32 %v2347_v55  ;;  %v1907_v33 = vpop.f32.mrb[8].mxu0 }
 0x18f   : > { %v4032_v34 = vpop.eup %4031  ;;  %4039 = vpow2.f32 %v3557_v30  ;;  %v3644_v14 = vadd.f32 %v1907_v33, %v4881_v35  ;;  %v1909_v11 = vpop.f32.mrb[9].mxu0 }
 0x190   : > { %v2666_v21 = vadd.f32 1.0, %v4032_v34  ;;  %4041 = vtanh.f32 %v2349_v29  ;;  %v3645_v24 = vadd.f32 %v1909_v11, %v4883_v36  ;;  %v1911_v49 = vpop.f32.mrb[10].mxu0  ;;  %v2353_v36 = vadd.f32 %v3643_v2, %v5097_v27  ;;  %v4029_v2 = vld [vmem:[%s4569_s18 + $0x110] sm:$0xff]  }
 0x191   : > { %v4034_v6 = vpop.eup %4033  ;;  %v2354_v28 = vadd.f32 %v3644_v14, %v5083_v43  ;;  %v3646_v5 = vadd.f32 %v1911_v49, %v4889_v39  ;;  %v1913_v50 = vpop.f32.mrb[11].mxu0  ;;  %v2923_v49 = vld [vmem:[%s5133_s13 + $0x8] sm:$0xff] }
 0x192   : > { %4043 = vrcp.f32 %v2666_v21  ;;  %v2667_v9 = vadd.f32 1.0, %v4034_v6  ;;  %v3647_v35 = vadd.f32 %v1913_v50, %v4891_v40 }
 0x193   : > { %v3558_v22 = vmul.f32 -1.442695, %v2354_v28  ;;  %v2356_v13 = vadd.f32 %v3646_v5, %v5083_v43  ;;  %3458 = vmatmul.mubr.msk.bf16.gmra.mrb[116].mxu1 %vm544_vm1, %v4852_v25  ;;  %3551 = vmatmul.mubr.msk.bf16.gmra.mrb[116].mxu0 %vm544_vm1, %v4028_v60 }
 0x194   : > { %4045 = vrcp.f32 %v2667_v9  ;;  %1423 = vmatprep.mubr.bf16.mxu1 %v5481_v23  ;;  %2185 = vmatprep.mubr.bf16.mxu0 %v5481_v23  ;;  %v2357_v9 = vadd.f32 %v3647_v35, %v5097_v27 }
 0x195   : > { %4047 = vpow2.f32 %v3558_v22  ;;  %v3559_v39 = vmul.f32 -1.442695, %v2356_v13 }
 0x196   : > { %4049 = vtanh.f32 %v2351_v19  ;;  %v1917_v25 = vpop.f32.mrb[12].mxu0 }
 0x197   : > { %v4036_v40 = vpop.eup %4035  ;;  %4051 = vpow2.f32 %v3559_v39  ;;  %v3648_v7 = vadd.f32 %v1917_v25, %v4898_v41  ;;  %v1919_v55 = vpop.f32.mrb[13].mxu0  ;;  %v2355_v41 = vadd.f32 %v3645_v24, %v5097_v27  ;;  %v4030_v25 = vld [vmem:[%s4569_s18 + $0x118] sm:$0xff]  }
 0x198   : > { %v4038_v15 = vpop.eup %4037  ;;  %v2668_v29 = vadd.f32 1.0, %v4036_v40  ;;  %4053 = vtanh.f32 %v2353_v36  ;;  %v3649_v30 = vadd.f32 %v1919_v55, %v4900_v42  ;;  %v1921_v33 = vpop.f32.mrb[14].mxu0 }
 0x199   : > { %v4040_v34 = vpop.eup %4039  ;;  %v2358_v14 = vadd.f32 %v3648_v7, %v5083_v43  ;;  %v3650_v11 = vadd.f32 %v1921_v33, %v4904_v45  ;;  %v1923_v60 = vpop.f32.mrb[15].mxu0  ;;  %v2986_v5 = vsub.f32 %v4038_v15, %v2922_v17  ;;  %v2924_v7 = vld [vmem:[%s5133_s13 + $0x10] sm:$0xff] }
 0x19a   : > { %v4042_v21 = vpop.eup %4041  ;;  %4055 = vrcp.f32 %v2668_v29  ;;  %v2669_v6 = vadd.f32 1.0, %v4040_v34  ;;  %v3651_v28 = vadd.f32 %v1923_v60, %v4906_v46 }
 0x19b   : > { %v3560_v50 = vmul.f32 -1.442695, %v2358_v14  ;;  %v2360_v42 = vadd.f32 %v3650_v11, %v5083_v43  ;;  %3459 = vmatmul.mubr.msk.bf16.gmra.mrb[120].mxu1 %vm544_vm1, %v4869_v31  ;;  %3552 = vmatmul.mubr.msk.bf16.gmra.mrb[120].mxu0 %vm544_vm1, %v4029_v2  ;;  %v2987_v24 = vsub.f32 %v4042_v21, %v2923_v49  ;;  %v2925_v11 = vld [vmem:[%s5133_s13 + $0x18] sm:$0xff]  ;;  %v2359_v21 = vadd.f32 %v3649_v30, %v5097_v27 }
 0x19c   : > { %v4044_v45 = vpop.eup %4043  ;;  %4057 = vrcp.f32 %v2669_v6  ;;  %1433 = vmatprep.mubr.bf16.mxu1 %v5481_v23  ;;  %2195 = vmatprep.mubr.bf16.mxu0 %v5481_v23 }
 0x19d   : > { %v3050_v46 = vmul.f32 %v4044_v45, %v2986_v5  ;;  %4059 = vpow2.f32 %v3560_v50  ;;  %v3561_v19 = vmul.f32 -1.442695, %v2360_v42 }
 0x19e   : > { %v4046_v22 = vpop.eup %4045  ;;  %4061 = vtanh.f32 %v2355_v41  ;;  %v1927_v31 = vpop.f32.mrb[16].mxu0 }
 0x19f   : > { %v4048_v35 = vpop.eup %4047  ;;  %v3114_v13 = vadd.f32 %v3050_v46, %v2922_v17  ;;  %v3051_v36 = vmul.f32 %v4046_v22, %v2987_v24  ;;  %4063 = vpow2.f32 %v3561_v19  ;;  %v3652_v23 = vadd.f32 %v1927_v31, %v4912_v47  ;;  %v1929_v39 = vpop.f32.mrb[17].mxu0  ;;  %v2926_v31 = vld [vmem:[%s5133_s13 + $0x20] sm:$0xff] }
 0x1a0   : > { %v4050_v40 = vpop.eup %4049  ;;  %v2670_v55 = vadd.f32 1.0, %v4048_v35  ;;  %4065 = vtanh.f32 %v2357_v9  ;;  %v3653_v2 = vadd.f32 %v1929_v39, %v4914_v48  ;;  %v1931_v15 = vpop.f32.mrb[18].mxu0 }
 0x1a1   : > { %v4052_v29 = vpop.eup %4051  ;;  %3178 = vst [vmem:[%s5156_s19] sm:$0xff] %v3114_v13  ;;  %v3115_v33 = vadd.f32 %v3051_v36, %v2923_v49  ;;  %v2362_v17 = vadd.f32 %v3652_v23, %v5083_v43  ;;  %v3654_v34 = vadd.f32 %v1931_v15, %v4918_v51  ;;  %v1933_v14 = vpop.f32.mrb[19].mxu0  ;;  %v2988_v41 = vsub.f32 %v4050_v40, %v2924_v7 }
 0x1a2   : > { %v4054_v47 = vpop.eup %4053  ;;  %4067 = vrcp.f32 %v2670_v55  ;;  %v2671_v60 = vadd.f32 1.0, %v4052_v29  ;;  %v3655_v6 = vadd.f32 %v1933_v14, %v4920_v52  ;;  %v2361_v49 = vadd.f32 %v3651_v28, %v5097_v27  ;;  %v2927_v55 = vld [vmem:[%s5133_s13 + $0x28] sm:$0xff] }
 0x1a3   : > { %3179 = vst [vmem:[%s5156_s19 + $0x8] sm:$0xff] %v3115_v33  ;;  %v3562_v48 = vmul.f32 -1.442695, %v2362_v17  ;;  %v2364_v5 = vadd.f32 %v3654_v34, %v5083_v43  ;;  %3460 = vmatmul.mubr.msk.bf16.gmra.mrb[124].mxu1 %vm544_vm1, %v4886_v37  ;;  %3553 = vmatmul.mubr.msk.bf16.gmra.mrb[124].mxu0 %vm544_vm1, %v4030_v25  ;;  %v2989_v42 = vsub.f32 %v4054_v47, %v2925_v11 }
 0x1a4   : > { %v4056_v51 = vpop.eup %4055  ;;  %4069 = vrcp.f32 %v2671_v60  ;;  %v2363_v15 = vadd.f32 %v3653_v2, %v5097_v27  ;;  %v2365_v14 = vadd.f32 %v3655_v6, %v5097_v27 }
 0x1a5   : > { %v3052_v50 = vmul.f32 %v4056_v51, %v2988_v41  ;;  %4071 = vpow2.f32 %v3562_v48  ;;  %v3563_v30 = vmul.f32 -1.442695, %v2364_v5 }
 0x1a6   : > { %v4058_v52 = vpop.eup %4057  ;;  %4073 = vtanh.f32 %v2359_v21  ;;  %v1937_v45 = vpop.f32.mrb[20].mxu0 }
 0x1a7   : > { %v4060_v9 = vpop.eup %4059  ;;  %v3116_v46 = vadd.f32 %v3052_v50, %v2924_v7  ;;  %v3053_v24 = vmul.f32 %v4058_v52, %v2989_v42  ;;  %4075 = vpow2.f32 %v3563_v30  ;;  %v3656_v37 = vadd.f32 %v1937_v45, %v4926_v53  ;;  %v1939_v19 = vpop.f32.mrb[21].mxu0 }
 0x1a8   : > { %v4062_v22 = vpop.eup %4061  ;;  %v2672_v35 = vadd.f32 1.0, %v4060_v9  ;;  %4077 = vtanh.f32 %v2361_v49  ;;  %v3657_v28 = vadd.f32 %v1939_v19, %v4928_v54  ;;  %v1941_v13 = vpop.f32.mrb[22].mxu0  ;;  %v2928_v49 = vld [vmem:[%s5133_s13 + $0x30] sm:$0xff] }
 0x1a9   : > { %v4064_v36 = vpop.eup %4063  ;;  %3180 = vst [vmem:[%s5156_s19 + $0x10] sm:$0xff] %v3116_v46  ;;  %v3117_v23 = vadd.f32 %v3053_v24, %v2925_v11  ;;  %v2366_v39 = vadd.f32 %v3656_v37, %v5083_v43  ;;  %v3658_v25 = vadd.f32 %v1941_v13, %v4931_v56  ;;  %v1943_v40 = vpop.f32.mrb[23].mxu0  ;;  %v2990_v33 = vsub.f32 %v4062_v22, %v2926_v31  ;;  %v2929_v37 = vld [vmem:[%s5133_s13 + $0x38] sm:$0xff] }
 0x1aa   : > { %v4066_v7 = vpop.eup %4065  ;;  %4079 = vrcp.f32 %v2672_v35  ;;  %v2673_v53 = vadd.f32 1.0, %v4064_v36  ;;  %v3659_v29 = vadd.f32 %v1943_v40, %v4933_v57  ;;  %v2367_v19 = vadd.f32 %v3657_v28, %v5097_v27 }
 0x1ab   : > { %3181 = vst [vmem:[%s5156_s19 + $0x18] sm:$0xff] %v3117_v23  ;;  %v3564_v54 = vmul.f32 -1.442695, %v2366_v39  ;;  %v2368_v17 = vadd.f32 %v3658_v25, %v5083_v43  ;;  %v2991_v47 = vsub.f32 %v4066_v7, %v2927_v55 }
 0x1ac   : > { %v4068_v34 = vpop.eup %4067  ;;  %4081 = vrcp.f32 %v2673_v53  ;;  %v2369_v36 = vadd.f32 %v3659_v29, %v5097_v27 }
 0x1ad   : > { %v3054_v56 = vmul.f32 %v4068_v34, %v2990_v33  ;;  %4083 = vpow2.f32 %v3564_v54  ;;  %v3565_v11 = vmul.f32 -1.442695, %v2368_v17  ;;  %v2930_v33 = vld [vmem:[%s5133_s13 + $0x40] sm:$0xff] }
 0x1ae   : > { %v4070_v60 = vpop.eup %4069  ;;  %4085 = vtanh.f32 %v2363_v15  ;;  %v1947_v2 = vpop.f32.mrb[24].mxu0 }
 0x1af   : > { %v4072_v21 = vpop.eup %4071  ;;  %v3118_v57 = vadd.f32 %v3054_v56, %v2926_v31  ;;  %v3055_v41 = vmul.f32 %v4070_v60, %v2991_v47  ;;  %4087 = vpow2.f32 %v3565_v11  ;;  %v3660_v48 = vadd.f32 %v1947_v2, %v4940_v58  ;;  %v1949_v5 = vpop.f32.mrb[25].mxu0  ;;  %v2931_v2 = vld [vmem:[%s5133_s13 + $0x48] sm:$0xff] }
 0x1b0   : > { %v4074_v51 = vpop.eup %4073  ;;  %v2674_v50 = vadd.f32 1.0, %v4072_v21  ;;  %4089 = vtanh.f32 %v2365_v14  ;;  %v3661_v6 = vadd.f32 %v1949_v5, %v4942_v59  ;;  %v1951_v42 = vpop.f32.mrb[26].mxu0 }
 0x1b1   : > { %v4076_v30 = vpop.eup %4075  ;;  %3182 = vst [vmem:[%s5156_s19 + $0x20] sm:$0xff] %v3118_v57  ;;  %v3119_v52 = vadd.f32 %v3055_v41, %v2927_v55  ;;  %v2370_v45 = vadd.f32 %v3660_v48, %v5083_v43  ;;  %v3662_v9 = vadd.f32 %v1951_v42, %v4945_v61  ;;  %v1953_v46 = vpop.f32.mrb[27].mxu0  ;;  %v2992_v31 = vsub.f32 %v4074_v51, %v2928_v49 }
 0x1b2   : > { %v4078_v24 = vpop.eup %4077  ;;  %4091 = vrcp.f32 %v2674_v50  ;;  %v2675_v58 = vadd.f32 1.0, %v4076_v30  ;;  %v3663_v22 = vadd.f32 %v1953_v46, %v4947_v1  ;;  %v2371_v21 = vadd.f32 %v3661_v6, %v5097_v27 }
 0x1b3   : > { %3183 = vst [vmem:[%s5156_s19 + $0x28] sm:$0xff] %v3119_v52  ;;  %v3566_v59 = vmul.f32 -1.442695, %v2370_v45  ;;  %v2372_v35 = vadd.f32 %v3662_v9, %v5083_v43  ;;  %v2993_v23 = vsub.f32 %v4078_v24, %v2929_v37  ;;  %v2932_v24 = vld [vmem:[%s5133_s13 + $0x50] sm:$0xff] }
 0x1b4   : > { %v4080_v13 = vpop.eup %4079  ;;  %4093 = vrcp.f32 %v2675_v58  ;;  %v2373_v51 = vadd.f32 %v3663_v22, %v5097_v27 }
 0x1b5   : > { %v3056_v61 = vmul.f32 %v4080_v13, %v2992_v31  ;;  %4095 = vpow2.f32 %v3566_v59  ;;  %v3567_v39 = vmul.f32 -1.442695, %v2372_v35 }
 0x1b6   : > { %v4082_v25 = vpop.eup %4081  ;;  %4097 = vtanh.f32 %v2367_v19  ;;  %v1957_v28 = vpop.f32.mrb[28].mxu0 }
 0x1b7   : > { %v4084_v40 = vpop.eup %4083  ;;  %v3120_v1 = vadd.f32 %v3056_v61, %v2928_v49  ;;  %v3057_v7 = vmul.f32 %v4082_v25, %v2993_v23  ;;  %4099 = vpow2.f32 %v3567_v39  ;;  %v3664_v55 = vadd.f32 %v1957_v28, %v4954_v62  ;;  %v1959_v53 = vpop.f32.mrb[29].mxu0  ;;  %v2933_v61 = vld [vmem:[%s5133_s13 + $0x58] sm:$0xff] }
 0x1b8   : > { %v4086_v15 = vpop.eup %4085  ;;  %v2676_v54 = vadd.f32 1.0, %v4084_v40  ;;  %4101 = vtanh.f32 %v2369_v36  ;;  %v3665_v29 = vadd.f32 %v1959_v53, %v4956_v4  ;;  %v1961_v17 = vpop.f32.mrb[30].mxu0 }
 0x1b9   : > { %v4088_v34 = vpop.eup %4087  ;;  %3184 = vst [vmem:[%s5156_s19 + $0x30] sm:$0xff] %v3120_v1  ;;  %v3121_v14 = vadd.f32 %v3057_v7, %v2929_v37  ;;  %v2374_v56 = vadd.f32 %v3664_v55, %v5083_v43  ;;  %v3666_v47 = vadd.f32 %v1961_v17, %v4959_v8  ;;  %v1963_v11 = vpop.f32.mrb[31].mxu0  ;;  %v2994_v41 = vsub.f32 %v4086_v15, %v2930_v33 }
 0x1ba   : > { %v4090_v60 = vpop.eup %4089  ;;  %4103 = vrcp.f32 %v2676_v54  ;;  %v2677_v62 = vadd.f32 1.0, %v4088_v34  ;;  %v3667_v57 = vadd.f32 %v1963_v11, %v4961_v10  ;;  %v2375_v23 = vadd.f32 %v3665_v29, %v5097_v27 }
 0x1bb   : > { %3185 = vst [vmem:[%s5156_s19 + $0x38] sm:$0xff] %v3121_v14  ;;  %v3568_v4 = vmul.f32 -1.442695, %v2374_v56  ;;  %v2376_v48 = vadd.f32 %v3666_v47, %v5083_v43  ;;  %v2995_v49 = vsub.f32 %v4090_v60, %v2931_v2  ;;  %v2934_v14 = vld [vmem:[%s5133_s13 + $0x60] sm:$0xff] }
 0x1bc   : > { %v4092_v5 = vpop.eup %4091  ;;  %4105 = vrcp.f32 %v2677_v62  ;;  %v2377_v1 = vadd.f32 %v3667_v57, %v5097_v27 }
 0x1bd   : > { %v3058_v8 = vmul.f32 %v4092_v5, %v2994_v41  ;;  %4107 = vpow2.f32 %v3568_v4  ;;  %v3569_v50 = vmul.f32 -1.442695, %v2376_v48  ;;  %v2935_v4 = vld [vmem:[%s5133_s13 + $0x68] sm:$0xff] }
 0x1be   : > { %v4094_v42 = vpop.eup %4093  ;;  %4109 = vtanh.f32 %v2371_v21  ;;  %v1967_v6 = vpop.f32.mrb[32].mxu0 }
 0x1bf   : > { %v4096_v30 = vpop.eup %4095  ;;  %v3122_v10 = vadd.f32 %v3058_v8, %v2930_v33  ;;  %v3059_v52 = vmul.f32 %v4094_v42, %v2995_v49  ;;  %4111 = vpow2.f32 %v3569_v50  ;;  %v3668_v45 = vadd.f32 %v1967_v6, %v4968_v63  ;;  %v1969_v9 = vpop.f32.mrb[33].mxu0 }
 0x1c0   : > { %v4098_v46 = vpop.eup %4097  ;;  %v2678_v37 = vadd.f32 1.0, %v4096_v30  ;;  %4113 = vtanh.f32 %v2373_v51  ;;  %v3669_v58 = vadd.f32 %v1969_v9, %v4970_v12  ;;  %v1971_v19 = vpop.f32.mrb[34].mxu0 }
 0x1c1   : > { %v4100_v22 = vpop.eup %4099  ;;  %3186 = vst [vmem:[%s5156_s19 + $0x40] sm:$0xff] %v3122_v10  ;;  %v3123_v31 = vadd.f32 %v3059_v52, %v2931_v2  ;;  %v2378_v59 = vadd.f32 %v3668_v45, %v5083_v43  ;;  %v3670_v35 = vadd.f32 %v1971_v19, %v4973_v16  ;;  %v1973_v13 = vpop.f32.mrb[35].mxu0  ;;  %v2996_v25 = vsub.f32 %v4098_v46, %v2932_v24 }
 0x1c2   : > { %v4102_v36 = vpop.eup %4101  ;;  %4115 = vrcp.f32 %v2678_v37  ;;  %v2679_v63 = vadd.f32 1.0, %v4100_v22  ;;  %v3671_v39 = vadd.f32 %v1973_v13, %v4975_v18  ;;  %v2379_v48 = vadd.f32 %v3669_v58, %v5097_v27  ;;  %v2936_v37 = vld [vmem:[%s5133_s13 + $0x70] sm:$0xff] }
 0x1c3   : > { %3187 = vst [vmem:[%s5156_s19 + $0x48] sm:$0xff] %v3123_v31  ;;  %v3570_v12 = vmul.f32 -1.442695, %v2378_v59  ;;  %v2380_v28 = vadd.f32 %v3670_v35, %v5083_v43  ;;  %v2997_v7 = vsub.f32 %v4102_v36, %v2933_v61 }
 0x1c4   : > { %v4104_v40 = vpop.eup %4103  ;;  %4117 = vrcp.f32 %v2679_v63  ;;  %v2381_v50 = vadd.f32 %v3671_v39, %v5097_v27  ;;  %v2937_v63 = vld [vmem:[%s5133_s13 + $0x78] sm:$0xff]  ;;  %v5482_v39 = vld [vmem:[#allocation2_spill] sm:$0xff] }
 0x1c5   : > { %v3060_v16 = vmul.f32 %v4104_v40, %v2996_v25  ;;  %4119 = vpow2.f32 %v3570_v12  ;;  %v3571_v55 = vmul.f32 -1.442695, %v2380_v28 }
 0x1c6   : > { %v4106_v53 = vpop.eup %4105  ;;  %4121 = vtanh.f32 %v2375_v23  ;;  %v1977_v15 = vpop.f32.mrb[36].mxu0 }
 0x1c7   : > { %v4108_v33 = vpop.eup %4107  ;;  %v3124_v18 = vadd.f32 %v3060_v16, %v2932_v24  ;;  %v3061_v54 = vmul.f32 %v4106_v53, %v2997_v7  ;;  %4123 = vpow2.f32 %v3571_v55  ;;  %v3672_v29 = vadd.f32 %v1977_v15, %v4982_v0  ;;  %v1979_v17 = vpop.f32.mrb[37].mxu0 }
 0x1c8   : > { %v4110_v34 = vpop.eup %4109  ;;  %v2680_v56 = vadd.f32 1.0, %v4108_v33  ;;  %4125 = vtanh.f32 %v2377_v1  ;;  %v3673_v47 = vadd.f32 %v1979_v17, %v4984_v20  ;;  %v1981_v11 = vpop.f32.mrb[38].mxu0 }
 0x1c9   : > { %v4112_v60 = vpop.eup %4111  ;;  %3188 = vst [vmem:[%s5156_s19 + $0x50] sm:$0xff] %v3124_v18  ;;  %v3125_v2 = vadd.f32 %v3061_v54, %v2933_v61  ;;  %v2382_v62 = vadd.f32 %v3672_v29, %v5083_v43  ;;  %v3674_v21 = vadd.f32 %v1981_v11, %v4987_v26  ;;  %v1983_v57 = vpop.f32.mrb[39].mxu0  ;;  %v2998_v51 = vsub.f32 %v4110_v34, %v2934_v14  ;;  %v5483_v54 = vld [vmem:[#allocation3_spill] sm:$0xff] }
 0x1ca   : > { %v4114_v41 = vpop.eup %4113  ;;  %4127 = vrcp.f32 %v2680_v56  ;;  %v2681_v0 = vadd.f32 1.0, %v4112_v60  ;;  %v3675_v5 = vadd.f32 %v1983_v57, %v4989_v32  ;;  %v2383_v23 = vadd.f32 %v3673_v47, %v5097_v27  ;;  %v5484_v47 = vld [vmem:[#allocation4_spill] sm:$0xff]  ;;  %v5485_v57 = vld [vmem:[#allocation5_spill] sm:$0xff] }
 0x1cb   : > { %3189 = vst [vmem:[%s5156_s19 + $0x58] sm:$0xff] %v3125_v2  ;;  %v3572_v20 = vmul.f32 -1.442695, %v2382_v62  ;;  %v2384_v8 = vadd.f32 %v3674_v21, %v5083_v43  ;;  %v2999_v42 = vsub.f32 %v4114_v41, %v2935_v4 }
 0x1cc   : > { %v4116_v49 = vpop.eup %4115  ;;  %4129 = vrcp.f32 %v2681_v0  ;;  %v2385_v1 = vadd.f32 %v3675_v5, %v5097_v27 }
 0x1cd   : > { %v3062_v26 = vmul.f32 %v4116_v49, %v2998_v51  ;;  %4131 = vpow2.f32 %v3572_v20  ;;  %v3573_v6 = vmul.f32 -1.442695, %v2384_v8  ;;  %v5486_v20 = vld [vmem:[#allocation6_spill] sm:$0xff] }
 0x1ce   : > { %v4118_v30 = vpop.eup %4117  ;;  %4133 = vtanh.f32 %v2379_v48  ;;  %v1987_v10 = vpop.f32.mrb[40].mxu0  ;;  %v2939_v48 = vld [vmem:[%s5133_s13 + $0x88] sm:$0xff] }
 0x1cf   : > { %v4120_v52 = vpop.eup %4119  ;;  %v3126_v32 = vadd.f32 %v3062_v26, %v2934_v14  ;;  %v3063_v45 = vmul.f32 %v4118_v30, %v2999_v42  ;;  %4135 = vpow2.f32 %v3573_v6  ;;  %v3676_v9 = vadd.f32 %v1987_v10, %v4996_v3  ;;  %v1989_v46 = vpop.f32.mrb[41].mxu0  ;;  %v2938_v14 = vld [vmem:[%s5133_s13 + $0x80] sm:$0xff] }
 0x1d0   : > { %v4122_v24 = vpop.eup %4121  ;;  %v2682_v58 = vadd.f32 1.0, %v4120_v52  ;;  %4137 = vtanh.f32 %v2381_v50  ;;  %v3677_v19 = vadd.f32 %v1989_v46, %v4998_v38  ;;  %v1991_v22 = vpop.f32.mrb[42].mxu0 }
 0x1d1   : > { %v4124_v31 = vpop.eup %4123  ;;  %3190 = vst [vmem:[%s5156_s19 + $0x60] sm:$0xff] %v3126_v32  ;;  %v3127_v59 = vadd.f32 %v3063_v45, %v2935_v4  ;;  %v2386_v35 = vadd.f32 %v3676_v9, %v5083_v43  ;;  %v3678_v13 = vadd.f32 %v1991_v22, %v5001_v44  ;;  %v1993_v36 = vpop.f32.mrb[43].mxu0  ;;  %v3000_v12 = vsub.f32 %v4122_v24, %v2936_v37 }
 0x1d2   : > { %v4126_v61 = vpop.eup %4125  ;;  %4139 = vrcp.f32 %v2682_v58  ;;  %v2683_v3 = vadd.f32 1.0, %v4124_v31  ;;  %v3679_v25 = vadd.f32 %v1993_v36, %v5482_v39  ;;  %v2387_v51 = vadd.f32 %v3677_v19, %v5097_v27  ;;  %v2940_v31 = vld [vmem:[%s5133_s13 + $0x90] sm:$0xff] }
 0x1d3   : > { %3191 = vst [vmem:[%s5156_s19 + $0x68] sm:$0xff] %v3127_v59  ;;  %v3574_v38 = vmul.f32 -1.442695, %v2386_v35  ;;  %v2388_v28 = vadd.f32 %v3678_v13, %v5083_v43  ;;  %v3001_v16 = vsub.f32 %v4126_v61, %v2937_v63  ;;  %v5488_v35 = vld [vmem:[#allocation8_spill] sm:$0xff] }
 0x1d4   : > { %v4128_v40 = vpop.eup %4127  ;;  %4141 = vrcp.f32 %v2683_v3  ;;  %v2389_v6 = vadd.f32 %v3679_v25, %v5097_v27 }
 0x1d5   : > { %v3064_v44 = vmul.f32 %v4128_v40, %v3000_v12  ;;  %4143 = vpow2.f32 %v3574_v38  ;;  %v3575_v7 = vmul.f32 -1.442695, %v2388_v28  ;;  %v2941_v38 = vld [vmem:[%s5133_s13 + $0x98] sm:$0xff] }
 0x1d6   : > { %v4130_v55 = vpop.eup %4129  ;;  %4145 = vtanh.f32 %v2383_v23  ;;  %v1997_v53 = vpop.f32.mrb[44].mxu0  ;;  %v5489_v23 = vld [vmem:[#allocation9_spill] sm:$0xff] }
 0x1d7   : > { %v4132_v15 = vpop.eup %4131  ;;  %v3128_v33 = vadd.f32 %v3064_v44, %v2936_v37  ;;  %v3065_v18 = vmul.f32 %v4130_v55, %v3001_v16  ;;  %4147 = vpow2.f32 %v3575_v7  ;;  %v3680_v29 = vadd.f32 %v1997_v53, %v5483_v54  ;;  %v1999_v17 = vpop.f32.mrb[45].mxu0  ;;  %v5487_v37 = vld [vmem:[#allocation7_spill] sm:$0xff] }
 0x1d8   : > { %v4134_v34 = vpop.eup %4133  ;;  %v2684_v56 = vadd.f32 1.0, %v4132_v15  ;;  %4149 = vtanh.f32 %v2385_v1  ;;  %v3681_v11 = vadd.f32 %v1999_v17, %v5484_v47  ;;  %v2001_v60 = vpop.f32.mrb[46].mxu0  ;;  %v5490_v1 = vld [vmem:[#allocation10_spill] sm:$0xff]  ;;  %v5491_v47 = vld [vmem:[#allocation11_spill] sm:$0xff] }
 0x1d9   : > { %v4136_v2 = vpop.eup %4135  ;;  %3192 = vst [vmem:[%s5156_s19 + $0x70] sm:$0xff] %v3128_v33  ;;  %v3129_v62 = vadd.f32 %v3065_v18, %v2937_v63  ;;  %v2390_v21 = vadd.f32 %v3680_v29, %v5083_v43  ;;  %v3682_v41 = vadd.f32 %v2001_v60, %v5485_v57  ;;  %v2003_v4 = vpop.f32.mrb[47].mxu0  ;;  %v3002_v49 = vsub.f32 %v4134_v34, %v2938_v14  ;;  %v5492_v57 = vld [vmem:[#allocation12_spill] sm:$0xff] }
 0x1da   : > { %v4138_v0 = vpop.eup %4137  ;;  %4151 = vrcp.f32 %v2684_v56  ;;  %v2685_v5 = vadd.f32 1.0, %v4136_v2  ;;  %v3683_v8 = vadd.f32 %v2003_v4, %v5486_v20  ;;  %v2391_v40 = vadd.f32 %v3681_v11, %v5097_v27 }
 0x1db   : > { %3193 = vst [vmem:[%s5156_s19 + $0x78] sm:$0xff] %v3129_v62  ;;  %v3576_v50 = vmul.f32 -1.442695, %v2390_v21  ;;  %v2392_v26 = vadd.f32 %v3682_v41, %v5083_v43  ;;  %v3003_v10 = vsub.f32 %v4138_v0, %v2939_v48  ;;  %v2942_v62 = vld [vmem:[%s5133_s13 + $0xa0] sm:$0xff] }
 0x1dc   : > { %v4140_v42 = vpop.eup %4139  ;;  %4153 = vrcp.f32 %v2685_v5  ;;  %v2393_v15 = vadd.f32 %v3683_v8, %v5097_v27 }
 0x1dd   : > { %v3066_v30 = vmul.f32 %v4140_v42, %v3002_v49  ;;  %4155 = vpow2.f32 %v3576_v50  ;;  %v3577_v52 = vmul.f32 -1.442695, %v2392_v26  ;;  %v2943_v50 = vld [vmem:[%s5133_s13 + $0xa8] sm:$0xff] }
 0x1de   : > { %v4142_v32 = vpop.eup %4141  ;;  %4157 = vtanh.f32 %v2387_v51  ;;  %v2007_v45 = vpop.f32.mrb[48].mxu0  ;;  %v5493_v51 = vld [vmem:[#allocation13_spill] sm:$0xff] }
 0x1df   : > { %v4144_v9 = vpop.eup %4143  ;;  %v3130_v46 = vadd.f32 %v3066_v30, %v2938_v14  ;;  %v3067_v24 = vmul.f32 %v4142_v32, %v3003_v10  ;;  %4159 = vpow2.f32 %v3577_v52  ;;  %v3684_v58 = vadd.f32 %v2007_v45, %v5487_v37  ;;  %v2009_v19 = vpop.f32.mrb[49].mxu0 }
 0x1e0   : > { %v4146_v22 = vpop.eup %4145  ;;  %v2686_v59 = vadd.f32 1.0, %v4144_v9  ;;  %4161 = vtanh.f32 %v2389_v6  ;;  %v3685_v13 = vadd.f32 %v2009_v19, %v5488_v35  ;;  %v2011_v36 = vpop.f32.mrb[50].mxu0  ;;  %v5494_v6 = vld [vmem:[#allocation14_spill] sm:$0xff]  ;;  %v5495_v35 = vld [vmem:[#allocation15_spill] sm:$0xff] }
 0x1e1   : > { %v4148_v61 = vpop.eup %4147  ;;  %3194 = vst [vmem:[%s5156_s19 + $0x80] sm:$0xff] %v3130_v46  ;;  %v3131_v63 = vadd.f32 %v3067_v24, %v2939_v48  ;;  %v2394_v3 = vadd.f32 %v3684_v58, %v5083_v43  ;;  %v3686_v39 = vadd.f32 %v2011_v36, %v5489_v23  ;;  %v2013_v25 = vpop.f32.mrb[51].mxu0  ;;  %v3004_v16 = vsub.f32 %v4146_v22, %v2940_v31  ;;  %v5496_v23 = vld [vmem:[#allocation16_spill] sm:$0xff] }
 0x1e2   : > { %v4150_v12 = vpop.eup %4149  ;;  %4163 = vrcp.f32 %v2686_v59  ;;  %v2687_v28 = vadd.f32 1.0, %v4148_v61  ;;  %v3687_v44 = vadd.f32 %v2013_v25, %v5490_v1  ;;  %v2395_v42 = vadd.f32 %v3685_v13, %v5097_v27 }
 0x1e3   : > { %3195 = vst [vmem:[%s5156_s19 + $0x88] sm:$0xff] %v3131_v63  ;;  %v3578_v7 = vmul.f32 -1.442695, %v2394_v3  ;;  %v2396_v55 = vadd.f32 %v3686_v39, %v5083_v43  ;;  %v3005_v18 = vsub.f32 %v4150_v12, %v2941_v38  ;;  %v2944_v63 = vld [vmem:[%s5133_s13 + $0xb0] sm:$0xff] }
 0x1e4   : > { %v4152_v53 = vpop.eup %4151  ;;  %4165 = vrcp.f32 %v2687_v28  ;;  %v2397_v9 = vadd.f32 %v3687_v44, %v5097_v27 }
 0x1e5   : > { %v3068_v33 = vmul.f32 %v4152_v53, %v3004_v16  ;;  %4167 = vpow2.f32 %v3578_v7  ;;  %v3579_v54 = vmul.f32 -1.442695, %v2396_v55  ;;  %v2945_v7 = vld [vmem:[%s5133_s13 + $0xb8] sm:$0xff] }
 0x1e6   : > { %v4154_v29 = vpop.eup %4153  ;;  %4169 = vtanh.f32 %v2391_v40  ;;  %v2017_v17 = vpop.f32.mrb[52].mxu0  ;;  %v5497_v40 = vld [vmem:[#allocation17_spill] sm:$0xff] }
 0x1e7   : > { %v4156_v34 = vpop.eup %4155  ;;  %v3132_v14 = vadd.f32 %v3068_v33, %v2940_v31  ;;  %v3069_v56 = vmul.f32 %v4154_v29, %v3005_v18  ;;  %4171 = vpow2.f32 %v3579_v54  ;;  %v3688_v11 = vadd.f32 %v2017_v17, %v5491_v47  ;;  %v2019_v60 = vpop.f32.mrb[53].mxu0 }
 0x1e8   : > { %v4158_v2 = vpop.eup %4157  ;;  %v2688_v21 = vadd.f32 1.0, %v4156_v34  ;;  %4173 = vtanh.f32 %v2393_v15  ;;  %v3689_v41 = vadd.f32 %v2019_v60, %v5492_v57  ;;  %v2021_v4 = vpop.f32.mrb[54].mxu0  ;;  %v5498_v15 = vld [vmem:[#allocation18_spill] sm:$0xff]  ;;  %v5499_v57 = vld [vmem:[#allocation19_spill] sm:$0xff] }
 0x1e9   : > { %v4160_v0 = vpop.eup %4159  ;;  %3196 = vst [vmem:[%s5156_s19 + $0x90] sm:$0xff] %v3132_v14  ;;  %v3133_v48 = vadd.f32 %v3069_v56, %v2941_v38  ;;  %v2398_v5 = vadd.f32 %v3688_v11, %v5083_v43  ;;  %v3690_v20 = vadd.f32 %v2021_v4, %v5493_v51  ;;  %v2023_v8 = vpop.f32.mrb[55].mxu0  ;;  %v3006_v10 = vsub.f32 %v4158_v2, %v2942_v62  ;;  %v5500_v51 = vld [vmem:[#allocation20_spill] sm:$0xff] }
 0x1ea   : > { %v4162_v49 = vpop.eup %4161  ;;  %4175 = vrcp.f32 %v2688_v21  ;;  %v2689_v26 = vadd.f32 1.0, %v4160_v0  ;;  %v3691_v30 = vadd.f32 %v2023_v8, %v5494_v6  ;;  %v2399_v53 = vadd.f32 %v3689_v41, %v5097_v27 }
 0x1eb   : > { %3197 = vst [vmem:[%s5156_s19 + $0x98] sm:$0xff] %v3133_v48  ;;  %v3580_v52 = vmul.f32 -1.442695, %v2398_v5  ;;  %v2400_v32 = vadd.f32 %v3690_v20, %v5083_v43  ;;  %v3007_v24 = vsub.f32 %v4162_v49, %v2943_v50  ;;  %v2946_v48 = vld [vmem:[%s5133_s13 + $0xc0] sm:$0xff] }
 0x1ec   : > { %v4164_v45 = vpop.eup %4163  ;;  %4177 = vrcp.f32 %v2689_v26  ;;  %v2401_v34 = vadd.f32 %v3691_v30, %v5097_v27 }
 0x1ed   : > { %v3070_v46 = vmul.f32 %v4164_v45, %v3006_v10  ;;  %4179 = vpow2.f32 %v3580_v52  ;;  %v3581_v37 = vmul.f32 -1.442695, %v2400_v32  ;;  %v2947_v52 = vld [vmem:[%s5133_s13 + $0xc8] sm:$0xff] }
 0x1ee   : > { %v4166_v58 = vpop.eup %4165  ;;  %4181 = vtanh.f32 %v2395_v42  ;;  %v2027_v19 = vpop.f32.mrb[56].mxu0  ;;  %v5501_v42 = vld [vmem:[#allocation21_spill] sm:$0xff] }
 0x1ef   : > { %v4168_v22 = vpop.eup %4167  ;;  %v3134_v31 = vadd.f32 %v3070_v46, %v2942_v62  ;;  %v3071_v59 = vmul.f32 %v4166_v58, %v3007_v24  ;;  %4183 = vpow2.f32 %v3581_v37  ;;  %v3692_v13 = vadd.f32 %v2027_v19, %v5495_v35  ;;  %v2029_v36 = vpop.f32.mrb[57].mxu0 }
 0x1f0   : > { %v4170_v61 = vpop.eup %4169  ;;  %v2690_v3 = vadd.f32 1.0, %v4168_v22  ;;  %4185 = vtanh.f32 %v2397_v9  ;;  %v3693_v39 = vadd.f32 %v2029_v36, %v5496_v23  ;;  %v2031_v25 = vpop.f32.mrb[58].mxu0  ;;  %v5502_v9 = vld [vmem:[#allocation22_spill] sm:$0xff] }
 0x1f1   : > { %v4172_v12 = vpop.eup %4171  ;;  %3198 = vst [vmem:[%s5156_s19 + $0xa0] sm:$0xff] %v3134_v31  ;;  %v3135_v38 = vadd.f32 %v3071_v59, %v2943_v50  ;;  %v2402_v28 = vadd.f32 %v3692_v13, %v5083_v43  ;;  %v3694_v1 = vadd.f32 %v2031_v25, %v5497_v40  ;;  %v2033_v44 = vpop.f32.mrb[59].mxu0  ;;  %v3008_v18 = vsub.f32 %v4170_v61, %v2944_v63 }
 0x1f2   : > { %v4174_v16 = vpop.eup %4173  ;;  %4187 = vrcp.f32 %v2690_v3  ;;  %v2691_v55 = vadd.f32 1.0, %v4172_v12  ;;  %v3695_v33 = vadd.f32 %v2033_v44, %v5498_v15  ;;  %v2403_v45 = vadd.f32 %v3693_v39, %v5097_v27 }
 0x1f3   : > { %3199 = vst [vmem:[%s5156_s19 + $0xa8] sm:$0xff] %v3135_v38  ;;  %v3582_v54 = vmul.f32 -1.442695, %v2402_v28  ;;  %v2404_v29 = vadd.f32 %v3694_v1, %v5083_v43  ;;  %v3009_v56 = vsub.f32 %v4174_v16, %v2945_v7  ;;  %v2948_v28 = vld [vmem:[%s5133_s13 + $0xd0] sm:$0xff] }
 0x1f4   : > { %v4176_v17 = vpop.eup %4175  ;;  %4189 = vrcp.f32 %v2691_v55  ;;  %v2405_v22 = vadd.f32 %v3695_v33, %v5097_v27 }
 0x1f5   : > { %v3072_v14 = vmul.f32 %v4176_v17, %v3008_v18  ;;  %4191 = vpow2.f32 %v3582_v54  ;;  %v3583_v47 = vmul.f32 -1.442695, %v2404_v29  ;;  %v2949_v29 = vld [vmem:[%s5133_s13 + $0xd8] sm:$0xff] }
 0x1f6   : > { %v4178_v11 = vpop.eup %4177  ;;  %4193 = vtanh.f32 %v2399_v53  ;;  %v2037_v60 = vpop.f32.mrb[60].mxu0 }
 0x1f7   : > { %v4180_v2 = vpop.eup %4179  ;;  %v3136_v62 = vadd.f32 %v3072_v14, %v2944_v63  ;;  %v3073_v21 = vmul.f32 %v4178_v11, %v3009_v56  ;;  %4195 = vpow2.f32 %v3583_v47  ;;  %v3696_v41 = vadd.f32 %v2037_v60, %v5499_v57  ;;  %v2039_v4 = vpop.f32.mrb[61].mxu0 }
 0x1f8   : > { %v4182_v0 = vpop.eup %4181  ;;  %v2692_v5 = vadd.f32 1.0, %v4180_v2  ;;  %4197 = vtanh.f32 %v2401_v34  ;;  %v3697_v20 = vadd.f32 %v2039_v4, %v5500_v51  ;;  %v2041_v8 = vpop.f32.mrb[62].mxu0 }
 0x1f9   : > { %v4184_v49 = vpop.eup %4183  ;;  %3200 = vst [vmem:[%s5156_s19 + $0xb0] sm:$0xff] %v3136_v62  ;;  %v3137_v50 = vadd.f32 %v3073_v21, %v2945_v7  ;;  %v2406_v26 = vadd.f32 %v3696_v41, %v5083_v43  ;;  %v3698_v6 = vadd.f32 %v2041_v8, %v5501_v42  ;;  %v2043_v30 = vpop.f32.mrb[63].mxu0  ;;  %v3010_v24 = vsub.f32 %v4182_v0, %v2946_v48 }
 0x1fa   : > { %v4186_v10 = vpop.eup %4185  ;;  %4199 = vrcp.f32 %v2692_v5  ;;  %v2693_v32 = vadd.f32 1.0, %v4184_v49  ;;  %v3699_v46 = vadd.f32 %v2043_v30, %v5502_v9  ;;  %v2407_v34 = vadd.f32 %v3697_v20, %v5097_v27 }
 0x1fb   : > { %3201 = vst [vmem:[%s5156_s19 + $0xb8] sm:$0xff] %v3137_v50  ;;  %v3584_v37 = vmul.f32 -1.442695, %v2406_v26  ;;  %v2408_v58 = vadd.f32 %v3698_v6, %v5083_v43  ;;  %v3011_v59 = vsub.f32 %v4186_v10, %v2947_v52  ;;  %v2950_v26 = vld [vmem:[%s5133_s13 + $0xe0] sm:$0xff] }
 0x1fc   : > { %v4188_v19 = vpop.eup %4187  ;;  %4201 = vrcp.f32 %v2693_v32  ;;  %v2409_v2 = vadd.f32 %v3699_v46, %v5097_v27 }
 0x1fd   : > { %v3074_v31 = vmul.f32 %v4188_v19, %v3010_v24  ;;  %4203 = vpow2.f32 %v3584_v37  ;;  %v3585_v35 = vmul.f32 -1.442695, %v2408_v58  ;;  %v2951_v58 = vld [vmem:[%s5133_s13 + $0xe8] sm:$0xff] }
 0x1fe   : > { %v4190_v13 = vpop.eup %4189  ;;  %4205 = vtanh.f32 %v2403_v45  ;;  %v1285_v36 = vpop.f32.mrb[64].mxu1 }
 0x1ff   : > { %v2047_v61 = vpop.f32.mrb[64].mxu0  ;;  %v4192_v63 = vpop.eup %4191  ;;  %v3138_v3 = vadd.f32 %v3074_v31, %v2946_v48  ;;  %v3075_v23 = vmul.f32 %v4190_v13, %v3011_v59  ;;  %4207 = vpow2.f32 %v3585_v35 }
 0x200   : > { %v3700_v39 = vadd.f32 %v2047_v61, %v1285_v36  ;;  %v1287_v25 = vpop.f32.mrb[65].mxu1  ;;  %v2049_v12 = vpop.f32.mrb[65].mxu0  ;;  %v2694_v40 = vadd.f32 1.0, %v4192_v63  ;;  %4209 = vtanh.f32 %v2405_v22 }
 0x201   : > { %v4194_v38 = vpop.eup %4193  ;;  %v3701_v1 = vadd.f32 %v2049_v12, %v1287_v25  ;;  %v1289_v44 = vpop.f32.mrb[66].mxu1  ;;  %3202 = vst [vmem:[%s5156_s19 + $0xc0] sm:$0xff] %v3138_v3  ;;  %v3139_v55 = vadd.f32 %v3075_v23, %v2947_v52 }
 0x202   : > { %v2051_v16 = vpop.f32.mrb[66].mxu0  ;;  %v4196_v7 = vpop.eup %4195  ;;  %v2410_v53 = vadd.f32 %v3700_v39, %v5083_v43  ;;  %4211 = vrcp.f32 %v2694_v40  ;;  %v3012_v56 = vsub.f32 %v4194_v38, %v2948_v28 }
 0x203   : > { %v3702_v15 = vadd.f32 %v2051_v16, %v1289_v44  ;;  %v1291_v33 = vpop.f32.mrb[67].mxu1  ;;  %v2053_v18 = vpop.f32.mrb[67].mxu0  ;;  %v2695_v17 = vadd.f32 1.0, %v4196_v7  ;;  %3203 = vst [vmem:[%s5156_s19 + $0xc8] sm:$0xff] %v3139_v55  ;;  %v2411_v22 = vadd.f32 %v3701_v1, %v5097_v27  ;;  %v2952_v55 = vld [vmem:[%s5133_s13 + $0xf0] sm:$0xff] }
 0x204   : > { %v4198_v54 = vpop.eup %4197  ;;  %v3703_v14 = vadd.f32 %v2053_v18, %v1291_v33  ;;  %v3586_v47 = vmul.f32 -1.442695, %v2410_v53 }
 0x205   : > { %v2412_v11 = vadd.f32 %v3702_v15, %v5083_v43  ;;  %v4200_v60 = vpop.eup %4199  ;;  %4213 = vrcp.f32 %v2695_v17  ;;  %v3013_v21 = vsub.f32 %v4198_v54, %v2949_v29 }
 0x206   : > { %v3076_v62 = vmul.f32 %v4200_v60, %v3012_v56  ;;  %4215 = vpow2.f32 %v3586_v47  ;;  %v4202_v41 = vpop.eup %4201  ;;  %v1295_v4 = vpop.f32.mrb[68].mxu1  ;;  %v2413_v61 = vadd.f32 %v3703_v14, %v5097_v27 }
 0x207   : > { %v3587_v57 = vmul.f32 -1.442695, %v2412_v11  ;;  %4217 = vtanh.f32 %v2407_v34  ;;  %v2057_v0 = vpop.f32.mrb[68].mxu0  ;;  %v4204_v48 = vpop.eup %4203  ;;  %v3077_v51 = vmul.f32 %v4202_v41, %v3013_v21  ;;  %v2953_v11 = vld [vmem:[%s5133_s13 + $0xf8] sm:$0xff] }
 0x208   : > { %v3140_v5 = vadd.f32 %v3076_v62, %v2948_v28  ;;  %v3704_v20 = vadd.f32 %v2057_v0, %v1295_v4  ;;  %v1297_v8 = vpop.f32.mrb[69].mxu1  ;;  %v2059_v49 = vpop.f32.mrb[69].mxu0  ;;  %v2696_v42 = vadd.f32 1.0, %v4204_v48 }
 0x209   : > { %4219 = vpow2.f32 %v3587_v57  ;;  %v4206_v50 = vpop.eup %4205  ;;  %v3705_v6 = vadd.f32 %v2059_v49, %v1297_v8  ;;  %v1299_v30 = vpop.f32.mrb[70].mxu1  ;;  %v3141_v32 = vadd.f32 %v3077_v51, %v2949_v29 }
 0x20a   : > { %4221 = vtanh.f32 %v2409_v2  ;;  %v2061_v10 = vpop.f32.mrb[70].mxu0  ;;  %v4208_v52 = vpop.eup %4207  ;;  %3204 = vst [vmem:[%s5156_s19 + $0xd0] sm:$0xff] %v3140_v5  ;;  %v2414_v45 = vadd.f32 %v3704_v20, %v5083_v43  ;;  %v3014_v59 = vsub.f32 %v4206_v50, %v2950_v26 }
 0x20b   : > { %v3706_v9 = vadd.f32 %v2061_v10, %v1299_v30  ;;  %v1301_v46 = vpop.f32.mrb[71].mxu1  ;;  %v2063_v24 = vpop.f32.mrb[71].mxu0  ;;  %4223 = vrcp.f32 %v2696_v42  ;;  %v2697_v19 = vadd.f32 1.0, %v4208_v52  ;;  %3205 = vst [vmem:[%s5156_s19 + $0xd8] sm:$0xff] %v3141_v32  ;;  %v2415_v2 = vadd.f32 %v3705_v6, %v5097_v27  ;;  %v2954_v32 = vld [vmem:[%s5133_s13 + $0x100] sm:$0xff] }
 0x20c   : > { %v4210_v37 = vpop.eup %4209  ;;  %v3707_v31 = vadd.f32 %v2063_v24, %v1301_v46  ;;  %v3588_v35 = vmul.f32 -1.442695, %v2414_v45 }
 0x20d   : > { %v2416_v13 = vadd.f32 %v3706_v9, %v5083_v43  ;;  %v4212_v36 = vpop.eup %4211  ;;  %4225 = vrcp.f32 %v2697_v19  ;;  %v3015_v3 = vsub.f32 %v4210_v37, %v2951_v58 }
 0x20e   : > { %v3078_v63 = vmul.f32 %v4212_v36, %v3014_v59  ;;  %4227 = vpow2.f32 %v3588_v35  ;;  %v1305_v25 = vpop.f32.mrb[72].mxu1  ;;  %v2067_v12 = vpop.f32.mrb[72].mxu0  ;;  %v2417_v0 = vadd.f32 %v3707_v31, %v5097_v27 }
 0x20f   : > { %v3589_v23 = vmul.f32 -1.442695, %v2416_v13  ;;  %v4214_v39 = vpop.eup %4213  ;;  %4229 = vtanh.f32 %v2411_v22  ;;  %v3708_v1 = vadd.f32 %v2067_v12, %v1305_v25  ;;  %v1307_v44 = vpop.f32.mrb[73].mxu1  ;;  %v2955_v13 = vld [vmem:[%s5133_s13 + $0x108] sm:$0xff] }
 0x210   : > { %v4216_v38 = vpop.eup %4215  ;;  %v3142_v28 = vadd.f32 %v3078_v63, %v2950_v26  ;;  %v3079_v40 = vmul.f32 %v4214_v39, %v3015_v3  ;;  %v2069_v16 = vpop.f32.mrb[73].mxu0 }
 0x211   : > { %4231 = vpow2.f32 %v3589_v23  ;;  %v4218_v7 = vpop.eup %4217  ;;  %v2698_v53 = vadd.f32 1.0, %v4216_v38  ;;  %v3709_v15 = vadd.f32 %v2069_v16, %v1307_v44  ;;  %v1309_v33 = vpop.f32.mrb[74].mxu1  ;;  %v2418_v17 = vadd.f32 %v3708_v1, %v5083_v43 }
 0x212   : > { %4233 = vtanh.f32 %v2413_v61  ;;  %v2071_v18 = vpop.f32.mrb[74].mxu0  ;;  %3206 = vst [vmem:[%s5156_s19 + $0xe0] sm:$0xff] %v3142_v28  ;;  %v3143_v29 = vadd.f32 %v3079_v40, %v2951_v58  ;;  %v1311_v14 = vpop.f32.mrb[75].mxu1  ;;  %v3016_v21 = vsub.f32 %v4218_v7, %v2952_v55 }
 0x213   : > { %v4220_v54 = vpop.eup %4219  ;;  %v3710_v34 = vadd.f32 %v2071_v18, %v1309_v33  ;;  %v2073_v56 = vpop.f32.mrb[75].mxu0  ;;  %4235 = vrcp.f32 %v2698_v53  ;;  %v3590_v57 = vmul.f32 -1.442695, %v2418_v17  ;;  %v2419_v61 = vadd.f32 %v3709_v15, %v5097_v27 }
 0x214   : > { %v4222_v47 = vpop.eup %4221  ;;  %v2699_v60 = vadd.f32 1.0, %v4220_v54  ;;  %v3711_v62 = vadd.f32 %v2073_v56, %v1311_v14  ;;  %3207 = vst [vmem:[%s5156_s19 + $0xe8] sm:$0xff] %v3143_v29  ;;  %v2956_v29 = vld [vmem:[%s5133_s13 + $0x110] sm:$0xff] }
 0x215   : > { %v2420_v41 = vadd.f32 %v3710_v34, %v5083_v43  ;;  %v4224_v4 = vpop.eup %4223  ;;  %v3017_v5 = vsub.f32 %v4222_v47, %v2953_v11 }
 0x216   : > { %4237 = vrcp.f32 %v2699_v60  ;;  %v3080_v48 = vmul.f32 %v4224_v4, %v3016_v21  ;;  %v1315_v8 = vpop.f32.mrb[76].mxu1  ;;  %v2077_v49 = vpop.f32.mrb[76].mxu0  ;;  %v2421_v12 = vadd.f32 %v3711_v62, %v5097_v27 }
 0x217   : > { %4239 = vpow2.f32 %v3590_v57  ;;  %v3591_v51 = vmul.f32 -1.442695, %v2420_v41  ;;  %v4226_v20 = vpop.eup %4225  ;;  %v3712_v6 = vadd.f32 %v2077_v49, %v1315_v8  ;;  %v1317_v30 = vpop.f32.mrb[77].mxu1  ;;  %v2957_v41 = vld [vmem:[%s5133_s13 + $0x118] sm:$0xff] }
 0x218   : > { %4241 = vtanh.f32 %v2415_v2  ;;  %v4228_v50 = vpop.eup %4227  ;;  %v3144_v26 = vadd.f32 %v3080_v48, %v2952_v55  ;;  %v3081_v42 = vmul.f32 %v4226_v20, %v3017_v5  ;;  %v2079_v10 = vpop.f32.mrb[77].mxu0 }
 0x219   : > { %4243 = vpow2.f32 %v3591_v51  ;;  %v4230_v52 = vpop.eup %4229  ;;  %v2700_v45 = vadd.f32 1.0, %v4228_v50  ;;  %v3713_v9 = vadd.f32 %v2079_v10, %v1317_v30  ;;  %v1319_v46 = vpop.f32.mrb[78].mxu1  ;;  %v2422_v19 = vadd.f32 %v3712_v6, %v5083_v43 }
 0x21a   : > { %4245 = vtanh.f32 %v2417_v0  ;;  %v2081_v24 = vpop.f32.mrb[78].mxu0  ;;  %3208 = vst [vmem:[%s5156_s19 + $0xf0] sm:$0xff] %v3144_v26  ;;  %v3145_v58 = vadd.f32 %v3081_v42, %v2953_v11  ;;  %v1321_v31 = vpop.f32.mrb[79].mxu1  ;;  %v3018_v3 = vsub.f32 %v4230_v52, %v2954_v32 }
 0x21b   : > { %v4232_v37 = vpop.eup %4231  ;;  %v3714_v22 = vadd.f32 %v2081_v24, %v1319_v46  ;;  %v2083_v59 = vpop.f32.mrb[79].mxu0  ;;  %4247 = vrcp.f32 %v2700_v45  ;;  %v3592_v23 = vmul.f32 -1.442695, %v2422_v19  ;;  %v2423_v0 = vadd.f32 %v3713_v9, %v5097_v27 }
 0x21c   : > { %v4234_v35 = vpop.eup %4233  ;;  %v2701_v36 = vadd.f32 1.0, %v4232_v37  ;;  %v3715_v63 = vadd.f32 %v2083_v59, %v1321_v31  ;;  %3209 = vst [vmem:[%s5156_s19 + $0xf8] sm:$0xff] %v3145_v58  ;;  %v2958_v58 = vld [vmem:[%s5133_s13 + $0x120] sm:$0xff] }
 0x21d   : > { %v2424_v39 = vadd.f32 %v3714_v22, %v5083_v43  ;;  %v4236_v25 = vpop.eup %4235  ;;  %v3019_v28 = vsub.f32 %v4234_v35, %v2955_v13 }
 0x21e   : > { %4249 = vrcp.f32 %v2701_v36  ;;  %v3082_v38 = vmul.f32 %v4236_v25, %v3018_v3  ;;  %v1325_v44 = vpop.f32.mrb[80].mxu1  ;;  %v2087_v16 = vpop.f32.mrb[80].mxu0  ;;  %v2425_v49 = vadd.f32 %v3715_v63, %v5097_v27 }
 0x21f   : > { %4251 = vpow2.f32 %v3592_v23  ;;  %v3593_v40 = vmul.f32 -1.442695, %v2424_v39  ;;  %v3716_v15 = vadd.f32 %v2087_v16, %v1325_v44  ;;  %v1327_v33 = vpop.f32.mrb[81].mxu1  ;;  %v2089_v18 = vpop.f32.mrb[81].mxu0  ;;  %v2959_v39 = vld [vmem:[%s5133_s13 + $0x128] sm:$0xff] }
 0x220   : > { %v4238_v1 = vpop.eup %4237  ;;  %4253 = vtanh.f32 %v2419_v61  ;;  %v3146_v55 = vadd.f32 %v3082_v38, %v2954_v32  ;;  %v3717_v34 = vadd.f32 %v2089_v18, %v1327_v33  ;;  %v1329_v14 = vpop.f32.mrb[82].mxu1 }
 0x221   : > { %v4240_v7 = vpop.eup %4239  ;;  %v3083_v53 = vmul.f32 %v4238_v1, %v3019_v28  ;;  %4255 = vpow2.f32 %v3593_v40  ;;  %v2091_v56 = vpop.f32.mrb[82].mxu0  ;;  %v2426_v60 = vadd.f32 %v3716_v15, %v5083_v43 }
 0x222   : > { %v4242_v54 = vpop.eup %4241  ;;  %v2702_v17 = vadd.f32 1.0, %v4240_v7  ;;  %4257 = vtanh.f32 %v2421_v12  ;;  %3210 = vst [vmem:[%s5156_s19 + $0x100] sm:$0xff] %v3146_v55  ;;  %v3718_v2 = vadd.f32 %v2091_v56, %v1329_v14  ;;  %v1331_v62 = vpop.f32.mrb[83].mxu1  ;;  %v2427_v12 = vadd.f32 %v3717_v34, %v5097_v27 }
 0x223   : > { %v4244_v47 = vpop.eup %4243  ;;  %v3147_v11 = vadd.f32 %v3083_v53, %v2955_v13  ;;  %v2093_v21 = vpop.f32.mrb[83].mxu0  ;;  %v3020_v5 = vsub.f32 %v4242_v54, %v2956_v29  ;;  %v3594_v51 = vmul.f32 -1.442695, %v2426_v60 }
 0x224   : > { %v4246_v57 = vpop.eup %4245  ;;  %4259 = vrcp.f32 %v2702_v17  ;;  %v2703_v4 = vadd.f32 1.0, %v4244_v47  ;;  %v3719_v48 = vadd.f32 %v2093_v21, %v1331_v62  ;;  %v2428_v20 = vadd.f32 %v3718_v2, %v5083_v43 }
 0x225   : > { %3211 = vst [vmem:[%s5156_s19 + $0x108] sm:$0xff] %v3147_v11  ;;  %v4248_v8 = vpop.eup %4247  ;;  %v3021_v26 = vsub.f32 %v4246_v57, %v2957_v41  ;;  %v2960_v11 = vld [vmem:[%s5133_s13 + $0x130] sm:$0xff] }
 0x226   : > { %4261 = vrcp.f32 %v2703_v4  ;;  %v3084_v50 = vmul.f32 %v4248_v8, %v3020_v5  ;;  %v3595_v42 = vmul.f32 -1.442695, %v2428_v20  ;;  %v1335_v30 = vpop.f32.mrb[84].mxu1  ;;  %v2097_v10 = vpop.f32.mrb[84].mxu0  ;;  %v2429_v16 = vadd.f32 %v3719_v48, %v5097_v27  ;;  %v2961_v20 = vld [vmem:[%s5133_s13 + $0x138] sm:$0xff] }
 0x227   : > { %4263 = vpow2.f32 %v3594_v51  ;;  %v3720_v9 = vadd.f32 %v2097_v10, %v1335_v30  ;;  %v1337_v46 = vpop.f32.mrb[85].mxu1  ;;  %v2099_v24 = vpop.f32.mrb[85].mxu0 }
 0x228   : > { %v4250_v6 = vpop.eup %4249  ;;  %4265 = vtanh.f32 %v2423_v0  ;;  %v3148_v32 = vadd.f32 %v3084_v50, %v2956_v29  ;;  %v3721_v22 = vadd.f32 %v2099_v24, %v1337_v46  ;;  %v1339_v31 = vpop.f32.mrb[86].mxu1 }
 0x229   : > { %v4252_v52 = vpop.eup %4251  ;;  %v3085_v45 = vmul.f32 %v4250_v6, %v3021_v26  ;;  %4267 = vpow2.f32 %v3595_v42  ;;  %v2101_v59 = vpop.f32.mrb[86].mxu0  ;;  %v2430_v36 = vadd.f32 %v3720_v9, %v5083_v43 }
 0x22a   : > { %v4254_v37 = vpop.eup %4253  ;;  %v2704_v19 = vadd.f32 1.0, %v4252_v52  ;;  %4269 = vtanh.f32 %v2425_v49  ;;  %3212 = vst [vmem:[%s5156_s19 + $0x110] sm:$0xff] %v3148_v32  ;;  %v3722_v61 = vadd.f32 %v2101_v59, %v1339_v31  ;;  %v1341_v63 = vpop.f32.mrb[87].mxu1  ;;  %v2431_v49 = vadd.f32 %v3721_v22, %v5097_v27 }
 0x22b   : > { %v4256_v35 = vpop.eup %4255  ;;  %v3149_v13 = vadd.f32 %v3085_v45, %v2957_v41  ;;  %v2103_v3 = vpop.f32.mrb[87].mxu0  ;;  %v3022_v28 = vsub.f32 %v4254_v37, %v2958_v58  ;;  %v3596_v40 = vmul.f32 -1.442695, %v2430_v36 }
 0x22c   : > { %v4258_v23 = vpop.eup %4257  ;;  %4271 = vrcp.f32 %v2704_v19  ;;  %v2705_v25 = vadd.f32 1.0, %v4256_v35  ;;  %v3723_v38 = vadd.f32 %v2103_v3, %v1341_v63  ;;  %v2432_v1 = vadd.f32 %v3722_v61, %v5083_v43 }
 0x22d   : > { %3213 = vst [vmem:[%s5156_s19 + $0x118] sm:$0xff] %v3149_v13  ;;  %v3023_v55 = vsub.f32 %v4258_v23, %v2959_v39  ;;  %v2962_v13 = vld [vmem:[%s5133_s13 + $0x140] sm:$0xff] }
 0x22e   : > { %v4260_v44 = vpop.eup %4259  ;;  %4273 = vrcp.f32 %v2705_v25  ;;  %v3597_v53 = vmul.f32 -1.442695, %v2432_v1  ;;  %v1345_v33 = vpop.f32.mrb[88].mxu1  ;;  %v2433_v10 = vadd.f32 %v3723_v38, %v5097_v27  ;;  %v2963_v1 = vld [vmem:[%s5133_s13 + $0x148] sm:$0xff] }
 0x22f   : > { %v3086_v7 = vmul.f32 %v4260_v44, %v3022_v28  ;;  %4275 = vpow2.f32 %v3596_v40  ;;  %v2107_v18 = vpop.f32.mrb[88].mxu0  ;;  %v1347_v14 = vpop.f32.mrb[89].mxu1 }
 0x230   : > { %v4262_v15 = vpop.eup %4261  ;;  %4277 = vtanh.f32 %v2427_v12  ;;  %v3724_v34 = vadd.f32 %v2107_v18, %v1345_v33  ;;  %v2109_v56 = vpop.f32.mrb[89].mxu0 }
 0x231   : > { %v4264_v54 = vpop.eup %4263  ;;  %v3150_v29 = vadd.f32 %v3086_v7, %v2958_v58  ;;  %v3087_v17 = vmul.f32 %v4262_v15, %v3023_v55  ;;  %4279 = vpow2.f32 %v3597_v53  ;;  %v3725_v2 = vadd.f32 %v2109_v56, %v1347_v14  ;;  %v1349_v62 = vpop.f32.mrb[90].mxu1 }
 0x232   : > { %v4266_v47 = vpop.eup %4265  ;;  %v2706_v60 = vadd.f32 1.0, %v4264_v54  ;;  %4281 = vtanh.f32 %v2429_v16  ;;  %v2111_v21 = vpop.f32.mrb[90].mxu0  ;;  %v2434_v4 = vadd.f32 %v3724_v34, %v5083_v43 }
 0x233   : > { %v4268_v57 = vpop.eup %4267  ;;  %3214 = vst [vmem:[%s5156_s19 + $0x120] sm:$0xff] %v3150_v29  ;;  %v3151_v41 = vadd.f32 %v3087_v17, %v2959_v39  ;;  %v3726_v0 = vadd.f32 %v2111_v21, %v1349_v62  ;;  %v1351_v48 = vpop.f32.mrb[91].mxu1  ;;  %v3024_v26 = vsub.f32 %v4266_v47, %v2960_v11  ;;  %v2435_v16 = vadd.f32 %v3725_v2, %v5097_v27 }
 0x234   : > { %v2113_v5 = vpop.f32.mrb[91].mxu0  ;;  %v4270_v51 = vpop.eup %4269  ;;  %4283 = vrcp.f32 %v2706_v60  ;;  %v2707_v8 = vadd.f32 1.0, %v4268_v57  ;;  %v3598_v42 = vmul.f32 -1.442695, %v2434_v4 }
 0x235   : > { %v3727_v50 = vadd.f32 %v2113_v5, %v1351_v48  ;;  %3215 = vst [vmem:[%s5156_s19 + $0x128] sm:$0xff] %v3151_v41  ;;  %v2436_v6 = vadd.f32 %v3726_v0, %v5083_v43  ;;  %v3025_v32 = vsub.f32 %v4270_v51, %v2961_v20  ;;  %v2964_v41 = vld [vmem:[%s5133_s13 + $0x150] sm:$0xff] }
 0x236   : > { %v4272_v30 = vpop.eup %4271  ;;  %4285 = vrcp.f32 %v2707_v8  ;;  %v1355_v46 = vpop.f32.mrb[92].mxu1 }
 0x237   : > { %v3088_v52 = vmul.f32 %v4272_v30, %v3024_v26  ;;  %4287 = vpow2.f32 %v3598_v42  ;;  %v3599_v45 = vmul.f32 -1.442695, %v2436_v6  ;;  %v2117_v24 = vpop.f32.mrb[92].mxu0  ;;  %v1357_v31 = vpop.f32.mrb[93].mxu1  ;;  %v2437_v18 = vadd.f32 %v3727_v50, %v5097_v27  ;;  %v2965_v6 = vld [vmem:[%s5133_s13 + $0x158] sm:$0xff] }
 0x238   : > { %v4274_v9 = vpop.eup %4273  ;;  %4289 = vtanh.f32 %v2431_v49  ;;  %v3728_v22 = vadd.f32 %v2117_v24, %v1355_v46  ;;  %v2119_v59 = vpop.f32.mrb[93].mxu0 }
 0x239   : > { %v4276_v37 = vpop.eup %4275  ;;  %v3152_v58 = vadd.f32 %v3088_v52, %v2960_v11  ;;  %v3089_v19 = vmul.f32 %v4274_v9, %v3025_v32  ;;  %4291 = vpow2.f32 %v3599_v45  ;;  %v3729_v61 = vadd.f32 %v2119_v59, %v1357_v31  ;;  %v1359_v63 = vpop.f32.mrb[94].mxu1 }
 0x23a   : > { %v4278_v35 = vpop.eup %4277  ;;  %v2708_v36 = vadd.f32 1.0, %v4276_v37  ;;  %4293 = vtanh.f32 %v2433_v10  ;;  %v2121_v3 = vpop.f32.mrb[94].mxu0  ;;  %v2438_v25 = vadd.f32 %v3728_v22, %v5083_v43 }
 0x23b   : > { %v4280_v23 = vpop.eup %4279  ;;  %3216 = vst [vmem:[%s5156_s19 + $0x130] sm:$0xff] %v3152_v58  ;;  %v3153_v39 = vadd.f32 %v3089_v19, %v2961_v20  ;;  %v3730_v12 = vadd.f32 %v2121_v3, %v1359_v63  ;;  %v1361_v38 = vpop.f32.mrb[95].mxu1  ;;  %v3026_v55 = vsub.f32 %v4278_v35, %v2962_v13  ;;  %v2439_v10 = vadd.f32 %v3729_v61, %v5097_v27 }
 0x23c   : > { %v2123_v28 = vpop.f32.mrb[95].mxu0  ;;  %v4282_v40 = vpop.eup %4281  ;;  %4295 = vrcp.f32 %v2708_v36  ;;  %v2709_v44 = vadd.f32 1.0, %v4280_v23  ;;  %v3600_v53 = vmul.f32 -1.442695, %v2438_v25 }
 0x23d   : > { %v3731_v7 = vadd.f32 %v2123_v28, %v1361_v38  ;;  %3217 = vst [vmem:[%s5156_s19 + $0x138] sm:$0xff] %v3153_v39  ;;  %v2440_v15 = vadd.f32 %v3730_v12, %v5083_v43  ;;  %v3027_v29 = vsub.f32 %v4282_v40, %v2963_v1  ;;  %v2966_v39 = vld [vmem:[%s5133_s13 + $0x160] sm:$0xff] }
 0x23e   : > { %v4284_v33 = vpop.eup %4283  ;;  %4297 = vrcp.f32 %v2709_v44  ;;  %v1365_v14 = vpop.f32.mrb[96].mxu1 }
 0x23f   : > { %v3090_v54 = vmul.f32 %v4284_v33, %v3026_v55  ;;  %4299 = vpow2.f32 %v3600_v53  ;;  %v3601_v17 = vmul.f32 -1.442695, %v2440_v15  ;;  %v2127_v56 = vpop.f32.mrb[96].mxu0  ;;  %v1367_v62 = vpop.f32.mrb[97].mxu1  ;;  %v2441_v24 = vadd.f32 %v3731_v7, %v5097_v27  ;;  %v2967_v15 = vld [vmem:[%s5133_s13 + $0x168] sm:$0xff] }
 0x240   : > { %v4286_v34 = vpop.eup %4285  ;;  %4301 = vtanh.f32 %v2435_v16  ;;  %v3732_v2 = vadd.f32 %v2127_v56, %v1365_v14  ;;  %v2129_v21 = vpop.f32.mrb[97].mxu0 }
 0x241   : > { %v4288_v47 = vpop.eup %4287  ;;  %v3154_v11 = vadd.f32 %v3090_v54, %v2962_v13  ;;  %v3091_v60 = vmul.f32 %v4286_v34, %v3027_v29  ;;  %4303 = vpow2.f32 %v3601_v17  ;;  %v3733_v0 = vadd.f32 %v2129_v21, %v1367_v62  ;;  %v1369_v48 = vpop.f32.mrb[98].mxu1 }
 0x242   : > { %v4290_v57 = vpop.eup %4289  ;;  %v2710_v4 = vadd.f32 1.0, %v4288_v47  ;;  %4305 = vtanh.f32 %v2437_v18  ;;  %v2131_v5 = vpop.f32.mrb[98].mxu0  ;;  %v2442_v8 = vadd.f32 %v3732_v2, %v5083_v43 }
 0x243   : > { %v4292_v51 = vpop.eup %4291  ;;  %3218 = vst [vmem:[%s5156_s19 + $0x140] sm:$0xff] %v3154_v11  ;;  %v3155_v20 = vadd.f32 %v3091_v60, %v2963_v1  ;;  %v3734_v49 = vadd.f32 %v2131_v5, %v1369_v48  ;;  %v1371_v50 = vpop.f32.mrb[99].mxu1  ;;  %v3028_v32 = vsub.f32 %v4290_v57, %v2964_v41  ;;  %v2443_v18 = vadd.f32 %v3733_v0, %v5097_v27 }
 0x244   : > { %v2133_v26 = vpop.f32.mrb[99].mxu0  ;;  %v4294_v42 = vpop.eup %4293  ;;  %4307 = vrcp.f32 %v2710_v4  ;;  %v2711_v30 = vadd.f32 1.0, %v4292_v51  ;;  %v3602_v45 = vmul.f32 -1.442695, %v2442_v8 }
 0x245   : > { %v3735_v52 = vadd.f32 %v2133_v26, %v1371_v50  ;;  %3219 = vst [vmem:[%s5156_s19 + $0x148] sm:$0xff] %v3155_v20  ;;  %v2444_v9 = vadd.f32 %v3734_v49, %v5083_v43  ;;  %v3029_v58 = vsub.f32 %v4294_v42, %v2965_v6  ;;  %v2968_v20 = vld [vmem:[%s5133_s13 + $0x170] sm:$0xff] }
 0x246   : > { %v4296_v46 = vpop.eup %4295  ;;  %4309 = vrcp.f32 %v2711_v30  ;;  %v1375_v31 = vpop.f32.mrb[100].mxu1 }
 0x247   : > { %v3092_v37 = vmul.f32 %v4296_v46, %v3028_v32  ;;  %4311 = vpow2.f32 %v3602_v45  ;;  %v3603_v19 = vmul.f32 -1.442695, %v2444_v9  ;;  %v2137_v59 = vpop.f32.mrb[100].mxu0  ;;  %v1377_v63 = vpop.f32.mrb[101].mxu1  ;;  %v2445_v56 = vadd.f32 %v3735_v52, %v5097_v27  ;;  %v2969_v9 = vld [vmem:[%s5133_s13 + $0x178] sm:$0xff] }
 0x248   : > { %v4298_v22 = vpop.eup %4297  ;;  %4313 = vtanh.f32 %v2439_v10  ;;  %v3736_v61 = vadd.f32 %v2137_v59, %v1375_v31  ;;  %v2139_v3 = vpop.f32.mrb[101].mxu0 }
 0x249   : > { %v4300_v35 = vpop.eup %4299  ;;  %v3156_v13 = vadd.f32 %v3092_v37, %v2964_v41  ;;  %v3093_v36 = vmul.f32 %v4298_v22, %v3029_v58  ;;  %4315 = vpow2.f32 %v3603_v19  ;;  %v3737_v12 = vadd.f32 %v2139_v3, %v1377_v63  ;;  %v1379_v38 = vpop.f32.mrb[102].mxu1 }
 0x24a   : > { %v4302_v23 = vpop.eup %4301  ;;  %v2712_v25 = vadd.f32 1.0, %v4300_v35  ;;  %4317 = vtanh.f32 %v2441_v24  ;;  %v2141_v28 = vpop.f32.mrb[102].mxu0  ;;  %v2446_v44 = vadd.f32 %v3736_v61, %v5083_v43 }
 0x24b   : > { %v4304_v40 = vpop.eup %4303  ;;  %3220 = vst [vmem:[%s5156_s19 + $0x150] sm:$0xff] %v3156_v13  ;;  %v3157_v1 = vadd.f32 %v3093_v36, %v2965_v6  ;;  %v3738_v16 = vadd.f32 %v2141_v28, %v1379_v38  ;;  %v1381_v7 = vpop.f32.mrb[103].mxu1  ;;  %v3030_v29 = vsub.f32 %v4302_v23, %v2966_v39  ;;  %v2447_v24 = vadd.f32 %v3737_v12, %v5097_v27 }
 0x24c   : > { %v2143_v55 = vpop.f32.mrb[103].mxu0  ;;  %v4306_v53 = vpop.eup %4305  ;;  %4319 = vrcp.f32 %v2712_v25  ;;  %v2713_v33 = vadd.f32 1.0, %v4304_v40  ;;  %v3604_v17 = vmul.f32 -1.442695, %v2446_v44 }
 0x24d   : > { %v3739_v54 = vadd.f32 %v2143_v55, %v1381_v7  ;;  %3221 = vst [vmem:[%s5156_s19 + $0x158] sm:$0xff] %v3157_v1  ;;  %v2448_v34 = vadd.f32 %v3738_v16, %v5083_v43  ;;  %v3031_v11 = vsub.f32 %v4306_v53, %v2967_v15  ;;  %v2970_v1 = vld [vmem:[%s5133_s13 + $0x180] sm:$0xff] }
 0x24e   : > { %v4308_v14 = vpop.eup %4307  ;;  %4321 = vrcp.f32 %v2713_v33  ;;  %v1385_v62 = vpop.f32.mrb[104].mxu1 }
 0x24f   : > { %v3094_v47 = vmul.f32 %v4308_v14, %v3030_v29  ;;  %4323 = vpow2.f32 %v3604_v17  ;;  %v3605_v60 = vmul.f32 -1.442695, %v2448_v34  ;;  %v2147_v21 = vpop.f32.mrb[104].mxu0  ;;  %v1387_v48 = vpop.f32.mrb[105].mxu1  ;;  %v2449_v59 = vadd.f32 %v3739_v54, %v5097_v27  ;;  %v2971_v34 = vld [vmem:[%s5133_s13 + $0x188] sm:$0xff] }
 0x250   : > { %v4310_v2 = vpop.eup %4309  ;;  %4325 = vtanh.f32 %v2443_v18  ;;  %v3740_v0 = vadd.f32 %v2147_v21, %v1385_v62  ;;  %v2149_v5 = vpop.f32.mrb[105].mxu0 }
 0x251   : > { %v4312_v57 = vpop.eup %4311  ;;  %v3158_v41 = vadd.f32 %v3094_v47, %v2966_v39  ;;  %v3095_v4 = vmul.f32 %v4310_v2, %v3031_v11  ;;  %4327 = vpow2.f32 %v3605_v60  ;;  %v3741_v49 = vadd.f32 %v2149_v5, %v1387_v48  ;;  %v1389_v50 = vpop.f32.mrb[106].mxu1 }
 0x252   : > { %v4314_v51 = vpop.eup %4313  ;;  %v2714_v8 = vadd.f32 1.0, %v4312_v57  ;;  %4329 = vtanh.f32 %v2445_v56  ;;  %v2151_v26 = vpop.f32.mrb[106].mxu0  ;;  %v2450_v30 = vadd.f32 %v3740_v0, %v5083_v43 }
 0x253   : > { %v4316_v42 = vpop.eup %4315  ;;  %3222 = vst [vmem:[%s5156_s19 + $0x160] sm:$0xff] %v3158_v41  ;;  %v3159_v6 = vadd.f32 %v3095_v4, %v2967_v15  ;;  %v3742_v10 = vadd.f32 %v2151_v26, %v1389_v50  ;;  %v1391_v52 = vpop.f32.mrb[107].mxu1  ;;  %v3032_v58 = vsub.f32 %v4314_v51, %v2968_v20  ;;  %v2451_v56 = vadd.f32 %v3741_v49, %v5097_v27 }
 0x254   : > { %v2153_v32 = vpop.f32.mrb[107].mxu0  ;;  %v4318_v45 = vpop.eup %4317  ;;  %4331 = vrcp.f32 %v2714_v8  ;;  %v2715_v46 = vadd.f32 1.0, %v4316_v42  ;;  %v3606_v19 = vmul.f32 -1.442695, %v2450_v30 }
 0x255   : > { %v3743_v37 = vadd.f32 %v2153_v32, %v1391_v52  ;;  %3223 = vst [vmem:[%s5156_s19 + $0x168] sm:$0xff] %v3159_v6  ;;  %v2452_v22 = vadd.f32 %v3742_v10, %v5083_v43  ;;  %v3033_v13 = vsub.f32 %v4318_v45, %v2969_v9  ;;  %v2972_v6 = vld [vmem:[%s5133_s13 + $0x190] sm:$0xff] }
 0x256   : > { %v4320_v31 = vpop.eup %4319  ;;  %4333 = vrcp.f32 %v2715_v46  ;;  %v1395_v63 = vpop.f32.mrb[108].mxu1 }
 0x257   : > { %v3096_v35 = vmul.f32 %v4320_v31, %v3032_v58  ;;  %4335 = vpow2.f32 %v3606_v19  ;;  %v3607_v36 = vmul.f32 -1.442695, %v2452_v22  ;;  %v2157_v3 = vpop.f32.mrb[108].mxu0  ;;  %v1397_v38 = vpop.f32.mrb[109].mxu1  ;;  %v2453_v21 = vadd.f32 %v3743_v37, %v5097_v27  ;;  %v2973_v22 = vld [vmem:[%s5133_s13 + $0x198] sm:$0xff] }
 0x258   : > { %v4322_v61 = vpop.eup %4321  ;;  %4337 = vtanh.f32 %v2447_v24  ;;  %v3744_v12 = vadd.f32 %v2157_v3, %v1395_v63  ;;  %v2159_v28 = vpop.f32.mrb[109].mxu0 }
 0x259   : > { %v4324_v23 = vpop.eup %4323  ;;  %v3160_v39 = vadd.f32 %v3096_v35, %v2968_v20  ;;  %v3097_v25 = vmul.f32 %v4322_v61, %v3033_v13  ;;  %4339 = vpow2.f32 %v3607_v36  ;;  %v3745_v16 = vadd.f32 %v2159_v28, %v1397_v38  ;;  %v1399_v7 = vpop.f32.mrb[110].mxu1 }
 0x25a   : > { %v4326_v40 = vpop.eup %4325  ;;  %v2716_v44 = vadd.f32 1.0, %v4324_v23  ;;  %4341 = vtanh.f32 %v2449_v59  ;;  %v2161_v55 = vpop.f32.mrb[110].mxu0  ;;  %v2454_v33 = vadd.f32 %v3744_v12, %v5083_v43 }
 0x25b   : > { %v4328_v53 = vpop.eup %4327  ;;  %3224 = vst [vmem:[%s5156_s19 + $0x170] sm:$0xff] %v3160_v39  ;;  %v3161_v15 = vadd.f32 %v3097_v25, %v2969_v9  ;;  %v3746_v18 = vadd.f32 %v2161_v55, %v1399_v7  ;;  %v1401_v54 = vpop.f32.mrb[111].mxu1  ;;  %v3034_v11 = vsub.f32 %v4326_v40, %v2970_v1  ;;  %v2455_v59 = vadd.f32 %v3745_v16, %v5097_v27 }
 0x25c   : > { %v2163_v29 = vpop.f32.mrb[111].mxu0  ;;  %v4330_v17 = vpop.eup %4329  ;;  %4343 = vrcp.f32 %v2716_v44  ;;  %v2717_v14 = vadd.f32 1.0, %v4328_v53  ;;  %v3608_v60 = vmul.f32 -1.442695, %v2454_v33 }
 0x25d   : > { %v3747_v47 = vadd.f32 %v2163_v29, %v1401_v54  ;;  %3225 = vst [vmem:[%s5156_s19 + $0x178] sm:$0xff] %v3161_v15  ;;  %v2456_v2 = vadd.f32 %v3746_v18, %v5083_v43  ;;  %v3035_v41 = vsub.f32 %v4330_v17, %v2971_v34  ;;  %v2974_v15 = vld [vmem:[%s5133_s13 + $0x1a0] sm:$0xff] }
 0x25e   : > { %v4332_v62 = vpop.eup %4331  ;;  %4345 = vrcp.f32 %v2717_v14  ;;  %v1405_v48 = vpop.f32.mrb[112].mxu1 }
 0x25f   : > { %v3098_v57 = vmul.f32 %v4332_v62, %v3034_v11  ;;  %4347 = vpow2.f32 %v3608_v60  ;;  %v3609_v4 = vmul.f32 -1.442695, %v2456_v2  ;;  %v2167_v5 = vpop.f32.mrb[112].mxu0  ;;  %v1407_v50 = vpop.f32.mrb[113].mxu1  ;;  %v2457_v3 = vadd.f32 %v3747_v47, %v5097_v27  ;;  %v2975_v2 = vld [vmem:[%s5133_s13 + $0x1a8] sm:$0xff] }
 0x260   : > { %v4334_v0 = vpop.eup %4333  ;;  %4349 = vtanh.f32 %v2451_v56  ;;  %v3748_v49 = vadd.f32 %v2167_v5, %v1405_v48  ;;  %v2169_v26 = vpop.f32.mrb[113].mxu0 }
 0x261   : > { %v4336_v51 = vpop.eup %4335  ;;  %v3162_v20 = vadd.f32 %v3098_v57, %v2970_v1  ;;  %v3099_v8 = vmul.f32 %v4334_v0, %v3035_v41  ;;  %4351 = vpow2.f32 %v3609_v4  ;;  %v3749_v10 = vadd.f32 %v2169_v26, %v1407_v50  ;;  %v1409_v52 = vpop.f32.mrb[114].mxu1 }
 0x262   : > { %v4338_v42 = vpop.eup %4337  ;;  %v2718_v30 = vadd.f32 1.0, %v4336_v51  ;;  %4353 = vtanh.f32 %v2453_v21  ;;  %v2171_v32 = vpop.f32.mrb[114].mxu0  ;;  %v2458_v46 = vadd.f32 %v3748_v49, %v5083_v43 }
 0x263   : > { %v4340_v45 = vpop.eup %4339  ;;  %3226 = vst [vmem:[%s5156_s19 + $0x180] sm:$0xff] %v3162_v20  ;;  %v3163_v9 = vadd.f32 %v3099_v8, %v2971_v34  ;;  %v3750_v24 = vadd.f32 %v2171_v32, %v1409_v52  ;;  %v1411_v37 = vpop.f32.mrb[115].mxu1  ;;  %v3036_v13 = vsub.f32 %v4338_v42, %v2972_v6  ;;  %v2459_v21 = vadd.f32 %v3749_v10, %v5097_v27 }
 0x264   : > { %v2173_v58 = vpop.f32.mrb[115].mxu0  ;;  %v4342_v19 = vpop.eup %4341  ;;  %4355 = vrcp.f32 %v2718_v30  ;;  %v2719_v31 = vadd.f32 1.0, %v4340_v45  ;;  %v3610_v36 = vmul.f32 -1.442695, %v2458_v46 }
 0x265   : > { %v3751_v35 = vadd.f32 %v2173_v58, %v1411_v37  ;;  %3227 = vst [vmem:[%s5156_s19 + $0x188] sm:$0xff] %v3163_v9  ;;  %v2460_v61 = vadd.f32 %v3750_v24, %v5083_v43  ;;  %v3037_v39 = vsub.f32 %v4342_v19, %v2973_v22  ;;  %v2976_v9 = vld [vmem:[%s5133_s13 + $0x1b0] sm:$0xff] }
 0x266   : > { %v4344_v63 = vpop.eup %4343  ;;  %4357 = vrcp.f32 %v2719_v31  ;;  %v1415_v38 = vpop.f32.mrb[116].mxu1 }
 0x267   : > { %v3100_v23 = vmul.f32 %v4344_v63, %v3036_v13  ;;  %4359 = vpow2.f32 %v3610_v36  ;;  %v3611_v25 = vmul.f32 -1.442695, %v2460_v61  ;;  %v2177_v28 = vpop.f32.mrb[116].mxu0  ;;  %v1417_v7 = vpop.f32.mrb[117].mxu1  ;;  %v2461_v5 = vadd.f32 %v3751_v35, %v5097_v27  ;;  %v2977_v61 = vld [vmem:[%s5133_s13 + $0x1b8] sm:$0xff] }
 0x268   : > { %v4346_v12 = vpop.eup %4345  ;;  %4361 = vtanh.f32 %v2455_v59  ;;  %v3752_v16 = vadd.f32 %v2177_v28, %v1415_v38  ;;  %v2179_v55 = vpop.f32.mrb[117].mxu0 }
 0x269   : > { %v4348_v40 = vpop.eup %4347  ;;  %v3164_v1 = vadd.f32 %v3100_v23, %v2972_v6  ;;  %v3101_v44 = vmul.f32 %v4346_v12, %v3037_v39  ;;  %4363 = vpow2.f32 %v3611_v25  ;;  %v3753_v18 = vadd.f32 %v2179_v55, %v1417_v7  ;;  %v1419_v54 = vpop.f32.mrb[118].mxu1 }
 0x26a   : > { %v4350_v53 = vpop.eup %4349  ;;  %v2720_v33 = vadd.f32 1.0, %v4348_v40  ;;  %4365 = vtanh.f32 %v2457_v3  ;;  %v2181_v29 = vpop.f32.mrb[118].mxu0  ;;  %v2462_v14 = vadd.f32 %v3752_v16, %v5083_v43 }
 0x26b   : > { %v4352_v17 = vpop.eup %4351  ;;  %3228 = vst [vmem:[%s5156_s19 + $0x190] sm:$0xff] %v3164_v1  ;;  %v3165_v34 = vadd.f32 %v3101_v44, %v2973_v22  ;;  %v3754_v56 = vadd.f32 %v2181_v29, %v1419_v54  ;;  %v1421_v47 = vpop.f32.mrb[119].mxu1  ;;  %v3038_v41 = vsub.f32 %v4350_v53, %v2974_v15  ;;  %v2463_v3 = vadd.f32 %v3753_v18, %v5097_v27 }
 0x26c   : > { %v2183_v11 = vpop.f32.mrb[119].mxu0  ;;  %v4354_v60 = vpop.eup %4353  ;;  %4367 = vrcp.f32 %v2720_v33  ;;  %v2721_v62 = vadd.f32 1.0, %v4352_v17  ;;  %v3612_v4 = vmul.f32 -1.442695, %v2462_v14 }
 0x26d   : > { %v3755_v57 = vadd.f32 %v2183_v11, %v1421_v47  ;;  %3229 = vst [vmem:[%s5156_s19 + $0x198] sm:$0xff] %v3165_v34  ;;  %v2464_v0 = vadd.f32 %v3754_v56, %v5083_v43  ;;  %v3039_v20 = vsub.f32 %v4354_v60, %v2975_v2  ;;  %v2978_v34 = vld [vmem:[%s5133_s13 + $0x1c0] sm:$0xff] }
 0x26e   : > { %v4356_v48 = vpop.eup %4355  ;;  %4369 = vrcp.f32 %v2721_v62  ;;  %v1425_v50 = vpop.f32.mrb[120].mxu1 }
 0x26f   : > { %v3102_v51 = vmul.f32 %v4356_v48, %v3038_v41  ;;  %4371 = vpow2.f32 %v3612_v4  ;;  %v3613_v8 = vmul.f32 -1.442695, %v2464_v0  ;;  %v2187_v26 = vpop.f32.mrb[120].mxu0  ;;  %v1427_v52 = vpop.f32.mrb[121].mxu1  ;;  %v2465_v28 = vadd.f32 %v3755_v57, %v5097_v27  ;;  %v2979_v0 = vld [vmem:[%s5133_s13 + $0x1c8] sm:$0xff] }
 0x270   : > { %v4358_v49 = vpop.eup %4357  ;;  %4373 = vtanh.f32 %v2459_v21  ;;  %v3756_v10 = vadd.f32 %v2187_v26, %v1425_v50  ;;  %v2189_v32 = vpop.f32.mrb[121].mxu0 }
 0x271   : > { %v4360_v42 = vpop.eup %4359  ;;  %v3166_v6 = vadd.f32 %v3102_v51, %v2974_v15  ;;  %v3103_v30 = vmul.f32 %v4358_v49, %v3039_v20  ;;  %4375 = vpow2.f32 %v3613_v8  ;;  %v3757_v24 = vadd.f32 %v2189_v32, %v1427_v52  ;;  %v1429_v37 = vpop.f32.mrb[122].mxu1 }
 0x272   : > { %v4362_v45 = vpop.eup %4361  ;;  %v2722_v46 = vadd.f32 1.0, %v4360_v42  ;;  %4377 = vtanh.f32 %v2461_v5  ;;  %v2191_v58 = vpop.f32.mrb[122].mxu0  ;;  %v2466_v31 = vadd.f32 %v3756_v10, %v5083_v43 }
 0x273   : > { %v4364_v19 = vpop.eup %4363  ;;  %3230 = vst [vmem:[%s5156_s19 + $0x1a0] sm:$0xff] %v3166_v6  ;;  %v3167_v22 = vadd.f32 %v3103_v30, %v2975_v2  ;;  %v3758_v59 = vadd.f32 %v2191_v58, %v1429_v37  ;;  %v1431_v35 = vpop.f32.mrb[123].mxu1  ;;  %v3040_v39 = vsub.f32 %v4362_v45, %v2976_v9  ;;  %v2467_v5 = vadd.f32 %v3757_v24, %v5097_v27 }
 0x274   : > { %v2193_v13 = vpop.f32.mrb[123].mxu0  ;;  %v4366_v36 = vpop.eup %4365  ;;  %4379 = vrcp.f32 %v2722_v46  ;;  %v2723_v63 = vadd.f32 1.0, %v4364_v19  ;;  %v3614_v25 = vmul.f32 -1.442695, %v2466_v31  ;;  %v2980_v46 = vld [vmem:[%s5133_s13 + $0x1d0] sm:$0xff]  ;;  %v2981_v19 = vld [vmem:[%s5133_s13 + $0x1d8] sm:$0xff] }
 0x275   : > { %v3759_v23 = vadd.f32 %v2193_v13, %v1431_v35  ;;  %3231 = vst [vmem:[%s5156_s19 + $0x1a8] sm:$0xff] %v3167_v22  ;;  %v2468_v12 = vadd.f32 %v3758_v59, %v5083_v43  ;;  %v3041_v1 = vsub.f32 %v4366_v36, %v2977_v61 }
 0x276   : > { %v4368_v38 = vpop.eup %4367  ;;  %4381 = vrcp.f32 %v2723_v63  ;;  %v1435_v7 = vpop.f32.mrb[124].mxu1 }
 0x277   : > { %v3104_v40 = vmul.f32 %v4368_v38, %v3040_v39  ;;  %4383 = vpow2.f32 %v3614_v25  ;;  %v3615_v44 = vmul.f32 -1.442695, %v2468_v12  ;;  %v2197_v55 = vpop.f32.mrb[124].mxu0  ;;  %v1437_v54 = vpop.f32.mrb[125].mxu1  ;;  %v2469_v26 = vadd.f32 %v3759_v23, %v5097_v27  ;;  %v2982_v12 = vld [vmem:[%s5133_s13 + $0x1e0] sm:$0xff] }
 0x278   : > { %v4370_v16 = vpop.eup %4369  ;;  %4385 = vtanh.f32 %v2463_v3  ;;  %v3760_v18 = vadd.f32 %v2197_v55, %v1435_v7  ;;  %v2199_v29 = vpop.f32.mrb[125].mxu0 }
 0x279   : > { %v4372_v53 = vpop.eup %4371  ;;  %v3168_v15 = vadd.f32 %v3104_v40, %v2976_v9  ;;  %v3105_v33 = vmul.f32 %v4370_v16, %v3041_v1  ;;  %4387 = vpow2.f32 %v3615_v44  ;;  %v3761_v56 = vadd.f32 %v2199_v29, %v1437_v54  ;;  %v1439_v47 = vpop.f32.mrb[126].mxu1  ;;  %v2984_v29 = vld [vmem:[%s5133_s13 + $0x1f0] sm:$0xff] }
 0x27a   : > { %v4374_v17 = vpop.eup %4373  ;;  %v2724_v14 = vadd.f32 1.0, %v4372_v53  ;;  %4389 = vtanh.f32 %v2465_v28  ;;  %v2201_v11 = vpop.f32.mrb[126].mxu0  ;;  %v2470_v62 = vadd.f32 %v3760_v18, %v5083_v43 }
 0x27b   : > { %v4376_v60 = vpop.eup %4375  ;;  %3232 = vst [vmem:[%s5156_s19 + $0x1b0] sm:$0xff] %v3168_v15  ;;  %v3169_v2 = vadd.f32 %v3105_v33, %v2977_v61  ;;  %v3762_v21 = vadd.f32 %v2201_v11, %v1439_v47  ;;  %v1441_v57 = vpop.f32.mrb[127].mxu1  ;;  %v3042_v20 = vsub.f32 %v4374_v17, %v2978_v34  ;;  %v2471_v31 = vadd.f32 %v3761_v56, %v5097_v27 }
 0x27c   : > { %v2203_v41 = vpop.f32.mrb[127].mxu0  ;;  %v4378_v4 = vpop.eup %4377  ;;  %4391 = vrcp.f32 %v2724_v14  ;;  %v2725_v48 = vadd.f32 1.0, %v4376_v60  ;;  %v3616_v8 = vmul.f32 -1.442695, %v2470_v62  ;;  %v2985_v14 = vld [vmem:[%s5133_s13 + $0x1f8] sm:$0xff] }
 0x27d   : > { %v3763_v51 = vadd.f32 %v2203_v41, %v1441_v57  ;;  %3233 = vst [vmem:[%s5156_s19 + $0x1b8] sm:$0xff] %v3169_v2  ;;  %v2472_v49 = vadd.f32 %v3762_v21, %v5083_v43  ;;  %v3043_v6 = vsub.f32 %v4378_v4, %v2979_v0 }
 0x27e   : > { %v4380_v50 = vpop.eup %4379  ;;  %4393 = vrcp.f32 %v2725_v48 }
 0x27f   : > { %v3106_v42 = vmul.f32 %v4380_v50, %v3042_v20  ;;  %4395 = vpow2.f32 %v3616_v8  ;;  %v3617_v30 = vmul.f32 -1.442695, %v2472_v49  ;;  %v2473_v13 = vadd.f32 %v3763_v51, %v5097_v27  ;;  %v2983_v27 = vld [vmem:[%s5133_s13 + $0x1e8] sm:$0xff] }
 0x280   : > { %v4382_v10 = vpop.eup %4381  ;;  %4397 = vtanh.f32 %v2467_v5 }
 0x281   : > { %v4384_v52 = vpop.eup %4383  ;;  %v3170_v32 = vadd.f32 %v3106_v42, %v2978_v34  ;;  %v3107_v45 = vmul.f32 %v4382_v10, %v3043_v6  ;;  %4399 = vpow2.f32 %v3617_v30 }
 0x282   : > { %v4386_v9 = vpop.eup %4385  ;;  %v2726_v43 = vadd.f32 1.0, %v4384_v52  ;;  %4401 = vtanh.f32 %v2469_v26 }
 0x283   : > { %v4388_v24 = vpop.eup %4387  ;;  %3234 = vst [vmem:[%s5156_s19 + $0x1c0] sm:$0xff] %v3170_v32  ;;  %v3171_v37 = vadd.f32 %v3107_v45, %v2979_v0  ;;  %v3044_v59 = vsub.f32 %v4386_v9, %v2980_v46 }
 0x284   : > { %v4390_v58 = vpop.eup %4389  ;;  %4403 = vrcp.f32 %v2726_v43  ;;  %v2727_v22 = vadd.f32 1.0, %v4388_v24 }
 0x285   : > { %3235 = vst [vmem:[%s5156_s19 + $0x1c8] sm:$0xff] %v3171_v37  ;;  %v3045_v61 = vsub.f32 %v4390_v58, %v2981_v19 }
 0x286   : > { %v4392_v35 = vpop.eup %4391  ;;  %4405 = vrcp.f32 %v2727_v22 }
 0x287   : > { %v3108_v36 = vmul.f32 %v4392_v35, %v3044_v59  ;;  %4407 = vtanh.f32 %v2471_v31 }
 0x288   : > { %v4394_v63 = vpop.eup %4393  ;;  %4409 = vtanh.f32 %v2473_v13 }
 0x289   : > { %v4396_v3 = vpop.eup %4395  ;;  %v3172_v23 = vadd.f32 %v3108_v36, %v2980_v46  ;;  %v3109_v39 = vmul.f32 %v4394_v63, %v3045_v61 }
 0x28a   : > { %v4398_v25 = vpop.eup %4397  ;;  %v2728_v38 = vadd.f32 1.0, %v4396_v3 }
 0x28b   : > { %v4400_v28 = vpop.eup %4399  ;;  %3236 = vst [vmem:[%s5156_s19 + $0x1d0] sm:$0xff] %v3172_v23  ;;  %v3173_v40 = vadd.f32 %v3109_v39, %v2981_v19  ;;  %v3046_v16 = vsub.f32 %v4398_v25, %v2982_v12 }
 0x28c   : > { %v4402_v1 = vpop.eup %4401  ;;  %4411 = vrcp.f32 %v2728_v38  ;;  %v2729_v44 = vadd.f32 1.0, %v4400_v28 }
 0x28d   : > { %3237 = vst [vmem:[%s5156_s19 + $0x1d8] sm:$0xff] %v3173_v40  ;;  %v3047_v53 = vsub.f32 %v4402_v1, %v2983_v27 }
 0x28e   : > { %v4404_v7 = vpop.eup %4403  ;;  %4413 = vrcp.f32 %v2729_v44 }
 0x28f   : > { %v3110_v55 = vmul.f32 %v4404_v7, %v3046_v16 }
 0x290   : > { %v4406_v15 = vpop.eup %4405 }
 0x291   : > { %v3174_v33 = vadd.f32 %v3110_v55, %v2982_v12  ;;  %v3111_v18 = vmul.f32 %v4406_v15, %v3047_v53  ;;  %v4408_v54 = vpop.eup %4407 }
 0x292   : > { %v4410_v34 = vpop.eup %4409  ;;  %v3048_v56 = vsub.f32 %v4408_v54, %v2984_v29 }
 0x293   : > { %3238 = vst [vmem:[%s5156_s19 + $0x1e0] sm:$0xff] %v3174_v33  ;;  %v3175_v17 = vadd.f32 %v3111_v18, %v2983_v27  ;;  %v3049_v60 = vsub.f32 %v4410_v34, %v2985_v14 }
 0x295   : > { %3239 = vst [vmem:[%s5156_s19 + $0x1e8] sm:$0xff] %v3175_v17 }
 0x296   : > { %v4412_v47 = vpop.eup %4411 }
 0x297   : > { %v3112_v11 = vmul.f32 %v4412_v47, %v3048_v56 }
 0x298   : > { %v4414_v2 = vpop.eup %4413 }
 0x299   : > { %v3176_v62 = vadd.f32 %v3112_v11, %v2984_v29  ;;  %v3113_v21 = vmul.f32 %v4414_v2, %v3049_v60 }
 0x29b   : > { %3240 = vst [vmem:[%s5156_s19 + $0x1f0] sm:$0xff] %v3176_v62  ;;  %v3177_v57 = vadd.f32 %v3113_v21, %v2985_v14 }
 0x29d   : > { %3241 = vst [vmem:[%s5156_s19 + $0x1f8] sm:$0xff] %v3177_v57 }
 0x29e PF: > { %s14_s15 = sadd.s32 1, %s4421_s15  }
 0x29f   : > { %p11_p4 = scmp.ge.s32.totalorder %s14_s15, 4  }
 0x2a1   :  { %13 = sbr.rel (!%p11_p4) target bundleno = 1 (0x1), region = 71 }

</bundles_post_ra>
